<compile_context>
chip_gen: v5e
topology: v5e:2x2
jax: 0.10.0
libtpu: 0.0.40
codegen_flags: <defaults>
</compile_context>

<pallas_src>
import functools
import math
from typing import NamedTuple, Tuple

import jax
import jax.numpy as jnp
from jax import lax
from jax.experimental import pallas as pl
from jax.experimental.pallas import tpu as pltpu

LANE = 128
SUB = 8
VMEM_BUDGET = 48 * 1024 * 1024  # conservative ceiling that fits v5e/v6e/v7x


def _round_up(x, m):
    return (x + m - 1) // m * m


def _norm_kinds(num_layers, normalization, input_norm):
    """Which normalization runs at each of the module's `normalizations` slots."""
    assert normalization in ("bn", "ln", "None")
    n_slots = 1 if num_layers == 1 else num_layers
    kinds = []
    for slot in range(n_slots):
        if normalization == "None":
            kinds.append("identity")
        elif slot == 0:
            kinds.append(normalization if input_norm else "identity")
        else:
            kinds.append(normalization)
    return tuple(kinds)


# ----------------------------------------------------------------------------
# Fused MLP kernel
# ----------------------------------------------------------------------------
def _apply_norm_in_kernel(x, kind, ref_iter, eps, f_real):
    """Normalization on a lane-padded activation.  Padded lanes stay zero."""
    if kind == "identity":
        return x
    g = next(ref_iter)[...]
    b = next(ref_iter)[...]
    if kind == "ln":
        f_pad = x.shape[-1]
        inv_f = 1.0 / float(f_real)
        mu = jnp.sum(x, axis=-1, keepdims=True) * inv_f      # padded lanes are zero
        diff = x - mu
        if f_pad != f_real:
            lanes = lax.broadcasted_iota(jnp.int32, (1, f_pad), 1)
            diff = jnp.where(lanes < f_real, diff, 0.0)       # mask pad out of var
        var = jnp.sum(diff * diff, axis=-1, keepdims=True) * inv_f
        # padded lanes: diff==0, g==0, b==0 -> stay exactly zero
        return diff * lax.rsqrt(var + eps) * g + b            # rsqrt -> EUP slot
    if kind == "bn":  # eval-mode BatchNorm1d with running statistics
        rm = next(ref_iter)[...]
        rv = next(ref_iter)[...]          # padded lanes: rm=0, rv=1, g=0, b=0
        return (x - rm) * lax.rsqrt(rv + eps) * g + b
    raise ValueError(kind)


def _mlp_kernel(*refs, num_layers, norm_kinds, norm_feats, eps):
    out_ref = refs[-1]
    it = iter(refs[:-1])

    x = next(it)[...]                                   # (row_tile, in_pad) f32
    x = _apply_norm_in_kernel(x, norm_kinds[0], it, eps, norm_feats[0])

    for i in range(num_layers):                          # fully unrolled at trace time
        wT = next(it)[...]                               # (fin_pad, fout_pad) bf16
        b = next(it)[...]                                # (1, fout_pad) f32
        y = jnp.dot(x.astype(wT.dtype), wT,
                    preferred_element_type=jnp.float32) + b
        if i < num_layers - 1:
            y = jnp.maximum(y, 0.0)                                       # ReLU
            y = _apply_norm_in_kernel(y, norm_kinds[i + 1], it, eps,
                                      norm_feats[i + 1])
            # TODO(synk): training-mode dropout is a no-op here (eval mode).
        x = y

    out_ref[...] = x.astype(out_ref.dtype)


# ----------------------------------------------------------------------------
# One-time parameter preparation (hoisted out of the per-call hot path)
# ----------------------------------------------------------------------------
class PreparedMLP(NamedTuple):
    operands: Tuple            # weights / biases / norm params in kernel order
    norm_kinds: Tuple[str, ...]
    norm_feats: Tuple[int, ...]
    layer_pads: Tuple[Tuple[int, int], ...]
    in_channels: int
    in_pad: int
    out_channels: int
    out_pad: int
    num_layers: int
    eps: float


def prepare_mlp_params(params, *, num_layers, normalization="ln",
                       input_norm=False, eps=1e-5, mxu_dtype=jnp.bfloat16):
    """Transpose / lane-pad / cast parameters once; reuse across forward calls."""
    norm_kinds = _norm_kinds(num_layers, normalization, input_norm)

    ws = [jnp.asarray(params[f"w{i}"], jnp.float32) for i in range(num_layers)]
    bs = [jnp.asarray(params[f"b{i}"], jnp.float32) for i in range(num_layers)]
    dims = [(w.shape[1], w.shape[0]) for w in ws]               # (fan_in, fan_out)
    pads = [(_round_up(fin, LANE), _round_up(fout, LANE)) for fin, fout in dims]
    in_channels, out_channels = dims[0][0], dims[-1][1]

    def pad_vec(v, feat_pad, fill=0.0):
        v = jnp.asarray(v, jnp.float32).reshape(1, -1)
        extra = feat_pad - v.shape[1]
        if extra:
            v = jnp.pad(v, ((0, 0), (0, extra)), constant_values=fill)
        return v

    norm_feats = []
    operands = []

    def norm_operands(slot, feat, feat_pad):
        kind = norm_kinds[slot]
        norm_feats.append(feat)
        if kind == "identity":
            return []
        ops = [pad_vec(params[f"norm{slot}_g"], feat_pad),
               pad_vec(params[f"norm{slot}_b"], feat_pad)]
        if kind == "bn":
            ops += [pad_vec(params[f"norm{slot}_rm"], feat_pad),
                    pad_vec(params[f"norm{slot}_rv"], feat_pad, fill=1.0)]
        return ops

    operands += norm_operands(0, in_channels, pads[0][0])
    for i in range(num_layers):
        (fin, fout), (fin_p, fout_p) = dims[i], pads[i]
        wT = jnp.pad(ws[i].T, ((0, fin_p - fin), (0, fout_p - fout))).astype(mxu_dtype)
        operands += [wT, pad_vec(bs[i], fout_p)]
        if i < num_layers - 1:
            operands += norm_operands(i + 1, fout, fout_p)

    return PreparedMLP(operands=tuple(operands), norm_kinds=norm_kinds,
                       norm_feats=tuple(norm_feats), layer_pads=tuple(pads),
                       in_channels=in_channels, in_pad=pads[0][0],
                       out_channels=out_channels, out_pad=pads[-1][1],
                       num_layers=num_layers, eps=float(eps))


# ----------------------------------------------------------------------------
# Forward wrapper: one fused pallas_call
# ----------------------------------------------------------------------------
def mlp_forward(x, prep: PreparedMLP, *, row_tile=512):
    n, c_in = x.shape
    assert c_in == prep.in_channels

    # Lane-pad input features; row-pad to the chosen tile.
    x_p = jnp.asarray(x, jnp.float32)
    if prep.in_pad != c_in:
        x_p = jnp.pad(x_p, ((0, 0), (0, prep.in_pad - c_in)))

    # Row tile: >=2 grid steps whenever possible so "parallel" can feed both
    # TensorCores on v7x; single step only for truly tiny (launch-bound) n.
    n8 = _round_up(n, SUB)
    if n8 >= 2 * SUB:
        rt = min(row_tile, _round_up((n8 + 1) // 2, SUB))
    else:
        rt = n8
    rt = max(rt, SUB)

    # Explicit VMEM budgeting (v5e: 16 MiB default scoped; v7x: 64 MiB physical).
    param_bytes = sum(int(o.size) * o.dtype.itemsize for o in prep.operands)

    def act_bytes(r):  # double-buffered input + output activation tiles
        return 2 * r * (prep.in_pad + prep.out_pad) * 4

    while rt > SUB and param_bytes + act_bytes(rt) > VMEM_BUDGET:
        rt = max(SUB, _round_up(rt // 2, SUB))
    # TODO(synk): if the layer stack itself ever outgrows VMEM_BUDGET, a
    # K-tiled (emit_pipeline) weight-streaming path would be needed here.

    n_pad = _round_up(n, rt)
    if n_pad != n:
        x_p = jnp.pad(x_p, ((0, n_pad - n), (0, 0)))
    grid = (n_pad // rt,)

    vmem_limit = int(min(max(1.5 * (param_bytes + act_bytes(rt)), 4 << 20),
                         VMEM_BUDGET))

    flops = 2 * n_pad * sum(fp[0] * fp[1] for fp in prep.layer_pads)
    transcendentals = n_pad * sum(1 for k in prep.norm_kinds if k != "identity")
    bytes_accessed = (int(x_p.size) * 4 + param_bytes + n_pad * prep.out_pad * 4)
    cost = pl.CostEstimate(flops=int(flops), transcendentals=int(transcendentals),
                           bytes_accessed=int(bytes_accessed))

    kernel = functools.partial(_mlp_kernel, num_layers=prep.num_layers,
                               norm_kinds=prep.norm_kinds,
                               norm_feats=prep.norm_feats, eps=prep.eps)

    def build_specs(use_buffered):
        in_specs = [pl.BlockSpec((rt, prep.in_pad), lambda i: (i, 0))]
        for op in prep.operands:
            if use_buffered:
                # Constant blocks: single-buffer to halve resident VMEM.
                in_specs.append(pl.BlockSpec(op.shape, lambda i: (0, 0),
                                             pipeline_mode=pl.Buffered(1)))
            else:
                in_specs.append(pl.BlockSpec(op.shape, lambda i: (0, 0)))
        out_specs = pl.BlockSpec((rt, prep.out_pad), lambda i: (i, 0))
        return in_specs, out_specs

    def run(use_buffered):
        in_specs, out_specs = build_specs(use_buffered)
        return pl.pallas_call(
            kernel,
            out_shape=jax.ShapeDtypeStruct((n_pad, prep.out_pad), jnp.float32),
            grid=grid,
            in_specs=in_specs,
            out_specs=out_specs,
            compiler_params=pltpu.CompilerParams(
                dimension_semantics=("parallel",),
                vmem_limit_bytes=vmem_limit),
            cost_estimate=cost,
        )(x_p, *prep.operands)

    try:
        y = run(True)
    except Exception:
        # TODO(synk): pl.Buffered(1) unsupported on this jax build; fall back
        # to default double-buffering of the constant parameter blocks.
        y = run(False)

    return y[:n, :prep.out_channels]


# ----------------------------------------------------------------------------
# Pure-JAX reference (same eval-mode semantics as the PyTorch module)
# ----------------------------------------------------------------------------
def mlp_reference(x, params, *, num_layers, normalization="ln",
                  input_norm=False, eps=1e-5):
    norm_kinds = _norm_kinds(num_layers, normalization, input_norm)

    def apply_norm(x, slot):
        kind = norm_kinds[slot]
        if kind == "identity":
            return x
        g = params[f"norm{slot}_g"]
        b = params[f"norm{slot}_b"]
        if kind == "ln":
            mu = jnp.mean(x, axis=-1, keepdims=True)
            var = jnp.mean((x - mu) ** 2, axis=-1, keepdims=True)
            return (x - mu) / jnp.sqrt(var + eps) * g + b
        rm = params[f"norm{slot}_rm"]
        rv = params[f"norm{slot}_rv"]
        return (x - rm) / jnp.sqrt(rv + eps) * g + b

    x = apply_norm(x, 0)
    for i in range(num_layers - 1):
        x = jnp.dot(x, params[f"w{i}"].T, precision=lax.Precision.HIGHEST) + params[f"b{i}"]
        x = jnp.maximum(x, 0.0)
        x = apply_norm(x, i + 1)
    i = num_layers - 1
    return jnp.dot(x, params[f"w{i}"].T, precision=lax.Precision.HIGHEST) + params[f"b{i}"]


# ----------------------------------------------------------------------------
# Deterministic parameter init (PyTorch nn.Linear-style)
# ----------------------------------------------------------------------------
def init_mlp_params(key, in_channels, hidden_channels, out_channels, num_layers,
                    normalization="ln", input_norm=False):
    if num_layers == 1:
        layer_dims = [(in_channels, out_channels)]
    else:
        layer_dims = ([(in_channels, hidden_channels)]
                      + [(hidden_channels, hidden_channels)] * (num_layers - 2)
                      + [(hidden_channels, out_channels)])

    p = {}
    keys = jax.random.split(key, 2 * num_layers + 2)
    for i, (fin, fout) in enumerate(layer_dims):
        lim = 1.0 / math.sqrt(fin)
        p[f"w{i}"] = jax.random.uniform(keys[2 * i], (fout, fin), jnp.float32, -lim, lim)
        p[f"b{i}"] = jax.random.uniform(keys[2 * i + 1], (fout,), jnp.float32, -lim, lim)

    norm_kinds = _norm_kinds(num_layers, normalization, input_norm)
    kn = jax.random.split(keys[-1], max(len(norm_kinds), 1) * 2)
    for slot, kind in enumerate(norm_kinds):
        if kind == "identity":
            continue
        feat = in_channels if slot == 0 else hidden_channels
        p[f"norm{slot}_g"] = jnp.ones((feat,), jnp.float32)
        p[f"norm{slot}_b"] = jnp.zeros((feat,), jnp.float32)
        if kind == "bn":
            # TODO(synk): BatchNorm training-mode batch statistics not modeled;
            # eval-mode running stats are used (randomized to exercise the math).
            p[f"norm{slot}_rm"] = 0.1 * jax.random.normal(kn[2 * slot], (feat,), jnp.float32)
            p[f"norm{slot}_rv"] = jax.random.uniform(kn[2 * slot + 1], (feat,),
                                                     jnp.float32, 0.5, 1.5)
    return p


# ----------------------------------------------------------------------------
# Main
# ----------------------------------------------------------------------------
if __name__ == "__main__":
    key = jax.random.PRNGKey(0)

    configs = [
        dict(n=64, cin=16, hidden=32, cout=8, num_layers=3,
             normalization="ln", input_norm=True),
        dict(n=40, cin=12, hidden=32, cout=4, num_layers=2,
             normalization="bn", input_norm=False),
        dict(n=24, cin=16, hidden=32, cout=6, num_layers=1,
             normalization="None", input_norm=False),
    ]

    all_ok = True
    for cfg in configs:
        key, kx, kp = jax.random.split(key, 3)
        x = jax.random.normal(kx, (cfg["n"], cfg["cin"]), jnp.float32)
        params = init_mlp_params(kp, cfg["cin"], cfg["hidden"], cfg["cout"],
                                 cfg["num_layers"],
                                 normalization=cfg["normalization"],
                                 input_norm=cfg["input_norm"])

        prep = prepare_mlp_params(params, num_layers=cfg["num_layers"],
                                  normalization=cfg["normalization"],
                                  input_norm=cfg["input_norm"])

        y = mlp_forward(x, prep)
        y = jax.block_until_ready(y)

        y_ref = mlp_reference(x, params, num_layers=cfg["num_layers"],
                              normalization=cfg["normalization"],
                              input_norm=cfg["input_norm"])

        if y.shape != (cfg["n"], cfg["cout"]):
            all_ok = False
            print("shape mismatch:", y.shape, cfg)
            continue
        max_err = float(jnp.max(jnp.abs(y - y_ref)))
        if not (max_err < 5e-2):
            all_ok = False
            print("numerical mismatch:", max_err, cfg)

    if all_ok:
        print("KERNEL_OK")
</pallas_src>

<mosaic_0001>
module attributes {stable_mosaic.version = 11 : i64} {
  func.func @_mlp_kernel(%arg0: i32, %arg1: memref<32x128xf32, #tpu.memory_space<vmem>>, %arg2: memref<1x128xf32, #tpu.memory_space<vmem>>, %arg3: memref<1x128xf32, #tpu.memory_space<vmem>>, %arg4: memref<128x128xbf16, #tpu.memory_space<vmem>>, %arg5: memref<1x128xf32, #tpu.memory_space<vmem>>, %arg6: memref<1x128xf32, #tpu.memory_space<vmem>>, %arg7: memref<1x128xf32, #tpu.memory_space<vmem>>, %arg8: memref<128x128xbf16, #tpu.memory_space<vmem>>, %arg9: memref<1x128xf32, #tpu.memory_space<vmem>>, %arg10: memref<1x128xf32, #tpu.memory_space<vmem>>, %arg11: memref<1x128xf32, #tpu.memory_space<vmem>>, %arg12: memref<128x128xbf16, #tpu.memory_space<vmem>>, %arg13: memref<1x128xf32, #tpu.memory_space<vmem>>, %arg14: memref<32x128xf32, #tpu.memory_space<vmem>>) attributes {dimension_semantics = [#tpu.dimension_semantics<parallel>], iteration_bounds = array<i64: 2>, scalar_prefetch = 0 : i64, scratch_operands = 0 : i64, tpu.core_type = #tpu.core_type<tc>, window_params = [{transform_indices = @transform_0, window_bounds = array<i64: 32, 128>}, {pipeline_mode = #tpu.pipeline_mode<synchronous>, transform_indices = @transform_1, window_bounds = array<i64: 1, 128>}, {pipeline_mode = #tpu.pipeline_mode<synchronous>, transform_indices = @transform_2, window_bounds = array<i64: 1, 128>}, {pipeline_mode = #tpu.pipeline_mode<synchronous>, transform_indices = @transform_3, window_bounds = array<i64: 128, 128>}, {pipeline_mode = #tpu.pipeline_mode<synchronous>, transform_indices = @transform_4, window_bounds = array<i64: 1, 128>}, {pipeline_mode = #tpu.pipeline_mode<synchronous>, transform_indices = @transform_5, window_bounds = array<i64: 1, 128>}, {pipeline_mode = #tpu.pipeline_mode<synchronous>, transform_indices = @transform_6, window_bounds = array<i64: 1, 128>}, {pipeline_mode = #tpu.pipeline_mode<synchronous>, transform_indices = @transform_7, window_bounds = array<i64: 128, 128>}, {pipeline_mode = #tpu.pipeline_mode<synchronous>, transform_indices = @transform_8, window_bounds = array<i64: 1, 128>}, {pipeline_mode = #tpu.pipeline_mode<synchronous>, transform_indices = @transform_9, window_bounds = array<i64: 1, 128>}, {pipeline_mode = #tpu.pipeline_mode<synchronous>, transform_indices = @transform_10, window_bounds = array<i64: 1, 128>}, {pipeline_mode = #tpu.pipeline_mode<synchronous>, transform_indices = @transform_11, window_bounds = array<i64: 128, 128>}, {pipeline_mode = #tpu.pipeline_mode<synchronous>, transform_indices = @transform_12, window_bounds = array<i64: 1, 128>}, {transform_indices = @transform_13, window_bounds = array<i64: 32, 128>}]} {
    %c0 = arith.constant 0 : index
    %c0_0 = arith.constant 0 : index
    %0 = vector.load %arg1[%c0, %c0_0] : memref<32x128xf32, #tpu.memory_space<vmem>>, vector<32x128xf32>
    %c0_1 = arith.constant 0 : index
    %c0_2 = arith.constant 0 : index
    %1 = vector.load %arg2[%c0_1, %c0_2] : memref<1x128xf32, #tpu.memory_space<vmem>>, vector<1x128xf32>
    %c0_3 = arith.constant 0 : index
    %c0_4 = arith.constant 0 : index
    %2 = vector.load %arg3[%c0_3, %c0_4] : memref<1x128xf32, #tpu.memory_space<vmem>>, vector<1x128xf32>
    %cst = arith.constant dense<0.000000e+00> : vector<32xf32>
    %3 = vector.multi_reduction <add>, %0, %cst [1] : vector<32x128xf32> to vector<32xf32>
    %4 = vector.shape_cast %3 : vector<32xf32> to vector<32x1xf32>
    %cst_5 = arith.constant 6.250000e-02 : f32
    %5 = vector.broadcast %cst_5 : f32 to vector<32x1xf32>
    %6 = arith.mulf %4, %5 : vector<32x1xf32>
    %7 = vector.broadcast %6 : vector<32x1xf32> to vector<32x128xf32>
    %8 = arith.subf %0, %7 : vector<32x128xf32>
    %9 = tpu.iota {dimensions = array<i32: 1>} : vector<1x128xi32>
    %c16_i32 = arith.constant 16 : i32
    %10 = vector.broadcast %c16_i32 : i32 to vector<1x128xi32>
    %11 = arith.cmpi slt, %9, %10 : vector<1x128xi32>
    %cst_6 = arith.constant 0.000000e+00 : f32
    %12 = vector.shape_cast %11 : vector<1x128xi1> to vector<1x128xi1>
    %13 = vector.broadcast %12 : vector<1x128xi1> to vector<32x128xi1>
    %14 = vector.broadcast %cst_6 : f32 to vector<32x128xf32>
    %15 = arith.select %13, %8, %14 : vector<32x128xi1>, vector<32x128xf32>
    %16 = arith.mulf %15, %15 : vector<32x128xf32>
    %cst_7 = arith.constant dense<0.000000e+00> : vector<32xf32>
    %17 = vector.multi_reduction <add>, %16, %cst_7 [1] : vector<32x128xf32> to vector<32xf32>
    %18 = vector.shape_cast %17 : vector<32xf32> to vector<32x1xf32>
    %cst_8 = arith.constant 6.250000e-02 : f32
    %19 = vector.broadcast %cst_8 : f32 to vector<32x1xf32>
    %20 = arith.mulf %18, %19 : vector<32x1xf32>
    %cst_9 = arith.constant 9.99999974E-6 : f32
    %21 = vector.broadcast %cst_9 : f32 to vector<32x1xf32>
    %22 = arith.addf %20, %21 : vector<32x1xf32>
    %23 = math.rsqrt %22 : vector<32x1xf32>
    %24 = vector.broadcast %23 : vector<32x1xf32> to vector<32x128xf32>
    %25 = arith.mulf %15, %24 : vector<32x128xf32>
    %26 = vector.broadcast %1 : vector<1x128xf32> to vector<32x128xf32>
    %27 = arith.mulf %25, %26 : vector<32x128xf32>
    %28 = vector.broadcast %2 : vector<1x128xf32> to vector<32x128xf32>
    %29 = arith.addf %27, %28 : vector<32x128xf32>
    %c0_10 = arith.constant 0 : index
    %c0_11 = arith.constant 0 : index
    %30 = vector.load %arg4[%c0_10, %c0_11] : memref<128x128xbf16, #tpu.memory_space<vmem>>, vector<128x128xbf16>
    %c0_12 = arith.constant 0 : index
    %c0_13 = arith.constant 0 : index
    %31 = vector.load %arg5[%c0_12, %c0_13] : memref<1x128xf32, #tpu.memory_space<vmem>>, vector<1x128xf32>
    %32 = arith.truncf %29 : vector<32x128xf32> to vector<32x128xbf16>
    %cst_14 = arith.constant dense<0.000000e+00> : vector<32x128xf32>
    %33 = tpu.matmul %32, %30, %cst_14 {dimension_numbers = #tpu.dot_dimension_numbers<[1], [0], [0], [1], [0, 0, 1, 1], [], []>} : vector<32x128xbf16>, vector<128x128xbf16>, vector<32x128xf32> -> vector<32x128xf32>
    %34 = vector.broadcast %31 : vector<1x128xf32> to vector<32x128xf32>
    %35 = arith.addf %33, %34 : vector<32x128xf32>
    %cst_15 = arith.constant 0.000000e+00 : f32
    %36 = vector.broadcast %cst_15 : f32 to vector<32x128xf32>
    %37 = arith.maximumf %35, %36 : vector<32x128xf32>
    %c0_16 = arith.constant 0 : index
    %c0_17 = arith.constant 0 : index
    %38 = vector.load %arg6[%c0_16, %c0_17] : memref<1x128xf32, #tpu.memory_space<vmem>>, vector<1x128xf32>
    %c0_18 = arith.constant 0 : index
    %c0_19 = arith.constant 0 : index
    %39 = vector.load %arg7[%c0_18, %c0_19] : memref<1x128xf32, #tpu.memory_space<vmem>>, vector<1x128xf32>
    %cst_20 = arith.constant dense<0.000000e+00> : vector<32xf32>
    %40 = vector.multi_reduction <add>, %37, %cst_20 [1] : vector<32x128xf32> to vector<32xf32>
    %41 = vector.shape_cast %40 : vector<32xf32> to vector<32x1xf32>
    %cst_21 = arith.constant 3.125000e-02 : f32
    %42 = vector.broadcast %cst_21 : f32 to vector<32x1xf32>
    %43 = arith.mulf %41, %42 : vector<32x1xf32>
    %44 = vector.broadcast %43 : vector<32x1xf32> to vector<32x128xf32>
    %45 = arith.subf %37, %44 : vector<32x128xf32>
    %46 = tpu.iota {dimensions = array<i32: 1>} : vector<1x128xi32>
    %c32_i32 = arith.constant 32 : i32
    %47 = vector.broadcast %c32_i32 : i32 to vector<1x128xi32>
    %48 = arith.cmpi slt, %46, %47 : vector<1x128xi32>
    %cst_22 = arith.constant 0.000000e+00 : f32
    %49 = vector.shape_cast %48 : vector<1x128xi1> to vector<1x128xi1>
    %50 = vector.broadcast %49 : vector<1x128xi1> to vector<32x128xi1>
    %51 = vector.broadcast %cst_22 : f32 to vector<32x128xf32>
    %52 = arith.select %50, %45, %51 : vector<32x128xi1>, vector<32x128xf32>
    %53 = arith.mulf %52, %52 : vector<32x128xf32>
    %cst_23 = arith.constant dense<0.000000e+00> : vector<32xf32>
    %54 = vector.multi_reduction <add>, %53, %cst_23 [1] : vector<32x128xf32> to vector<32xf32>
    %55 = vector.shape_cast %54 : vector<32xf32> to vector<32x1xf32>
    %cst_24 = arith.constant 3.125000e-02 : f32
    %56 = vector.broadcast %cst_24 : f32 to vector<32x1xf32>
    %57 = arith.mulf %55, %56 : vector<32x1xf32>
    %cst_25 = arith.constant 9.99999974E-6 : f32
    %58 = vector.broadcast %cst_25 : f32 to vector<32x1xf32>
    %59 = arith.addf %57, %58 : vector<32x1xf32>
    %60 = math.rsqrt %59 : vector<32x1xf32>
    %61 = vector.broadcast %60 : vector<32x1xf32> to vector<32x128xf32>
    %62 = arith.mulf %52, %61 : vector<32x128xf32>
    %63 = vector.broadcast %38 : vector<1x128xf32> to vector<32x128xf32>
    %64 = arith.mulf %62, %63 : vector<32x128xf32>
    %65 = vector.broadcast %39 : vector<1x128xf32> to vector<32x128xf32>
    %66 = arith.addf %64, %65 : vector<32x128xf32>
    %c0_26 = arith.constant 0 : index
    %c0_27 = arith.constant 0 : index
    %67 = vector.load %arg8[%c0_26, %c0_27] : memref<128x128xbf16, #tpu.memory_space<vmem>>, vector<128x128xbf16>
    %c0_28 = arith.constant 0 : index
    %c0_29 = arith.constant 0 : index
    %68 = vector.load %arg9[%c0_28, %c0_29] : memref<1x128xf32, #tpu.memory_space<vmem>>, vector<1x128xf32>
    %69 = arith.truncf %66 : vector<32x128xf32> to vector<32x128xbf16>
    %cst_30 = arith.constant dense<0.000000e+00> : vector<32x128xf32>
    %70 = tpu.matmul %69, %67, %cst_30 {dimension_numbers = #tpu.dot_dimension_numbers<[1], [0], [0], [1], [0, 0, 1, 1], [], []>} : vector<32x128xbf16>, vector<128x128xbf16>, vector<32x128xf32> -> vector<32x128xf32>
    %71 = vector.broadcast %68 : vector<1x128xf32> to vector<32x128xf32>
    %72 = arith.addf %70, %71 : vector<32x128xf32>
    %cst_31 = arith.constant 0.000000e+00 : f32
    %73 = vector.broadcast %cst_31 : f32 to vector<32x128xf32>
    %74 = arith.maximumf %72, %73 : vector<32x128xf32>
    %c0_32 = arith.constant 0 : index
    %c0_33 = arith.constant 0 : index
    %75 = vector.load %arg10[%c0_32, %c0_33] : memref<1x128xf32, #tpu.memory_space<vmem>>, vector<1x128xf32>
    %c0_34 = arith.constant 0 : index
    %c0_35 = arith.constant 0 : index
    %76 = vector.load %arg11[%c0_34, %c0_35] : memref<1x128xf32, #tpu.memory_space<vmem>>, vector<1x128xf32>
    %cst_36 = arith.constant dense<0.000000e+00> : vector<32xf32>
    %77 = vector.multi_reduction <add>, %74, %cst_36 [1] : vector<32x128xf32> to vector<32xf32>
    %78 = vector.shape_cast %77 : vector<32xf32> to vector<32x1xf32>
    %cst_37 = arith.constant 3.125000e-02 : f32
    %79 = vector.broadcast %cst_37 : f32 to vector<32x1xf32>
    %80 = arith.mulf %78, %79 : vector<32x1xf32>
    %81 = vector.broadcast %80 : vector<32x1xf32> to vector<32x128xf32>
    %82 = arith.subf %74, %81 : vector<32x128xf32>
    %83 = tpu.iota {dimensions = array<i32: 1>} : vector<1x128xi32>
    %c32_i32_38 = arith.constant 32 : i32
    %84 = vector.broadcast %c32_i32_38 : i32 to vector<1x128xi32>
    %85 = arith.cmpi slt, %83, %84 : vector<1x128xi32>
    %cst_39 = arith.constant 0.000000e+00 : f32
    %86 = vector.shape_cast %85 : vector<1x128xi1> to vector<1x128xi1>
    %87 = vector.broadcast %86 : vector<1x128xi1> to vector<32x128xi1>
    %88 = vector.broadcast %cst_39 : f32 to vector<32x128xf32>
    %89 = arith.select %87, %82, %88 : vector<32x128xi1>, vector<32x128xf32>
    %90 = arith.mulf %89, %89 : vector<32x128xf32>
    %cst_40 = arith.constant dense<0.000000e+00> : vector<32xf32>
    %91 = vector.multi_reduction <add>, %90, %cst_40 [1] : vector<32x128xf32> to vector<32xf32>
    %92 = vector.shape_cast %91 : vector<32xf32> to vector<32x1xf32>
    %cst_41 = arith.constant 3.125000e-02 : f32
    %93 = vector.broadcast %cst_41 : f32 to vector<32x1xf32>
    %94 = arith.mulf %92, %93 : vector<32x1xf32>
    %cst_42 = arith.constant 9.99999974E-6 : f32
    %95 = vector.broadcast %cst_42 : f32 to vector<32x1xf32>
    %96 = arith.addf %94, %95 : vector<32x1xf32>
    %97 = math.rsqrt %96 : vector<32x1xf32>
    %98 = vector.broadcast %97 : vector<32x1xf32> to vector<32x128xf32>
    %99 = arith.mulf %89, %98 : vector<32x128xf32>
    %100 = vector.broadcast %75 : vector<1x128xf32> to vector<32x128xf32>
    %101 = arith.mulf %99, %100 : vector<32x128xf32>
    %102 = vector.broadcast %76 : vector<1x128xf32> to vector<32x128xf32>
    %103 = arith.addf %101, %102 : vector<32x128xf32>
    %c0_43 = arith.constant 0 : index
    %c0_44 = arith.constant 0 : index
    %104 = vector.load %arg12[%c0_43, %c0_44] : memref<128x128xbf16, #tpu.memory_space<vmem>>, vector<128x128xbf16>
    %c0_45 = arith.constant 0 : index
    %c0_46 = arith.constant 0 : index
    %105 = vector.load %arg13[%c0_45, %c0_46] : memref<1x128xf32, #tpu.memory_space<vmem>>, vector<1x128xf32>
    %106 = arith.truncf %103 : vector<32x128xf32> to vector<32x128xbf16>
    %cst_47 = arith.constant dense<0.000000e+00> : vector<32x128xf32>
    %107 = tpu.matmul %106, %104, %cst_47 {dimension_numbers = #tpu.dot_dimension_numbers<[1], [0], [0], [1], [0, 0, 1, 1], [], []>} : vector<32x128xbf16>, vector<128x128xbf16>, vector<32x128xf32> -> vector<32x128xf32>
    %108 = vector.broadcast %105 : vector<1x128xf32> to vector<32x128xf32>
    %109 = arith.addf %107, %108 : vector<32x128xf32>
    %c0_48 = arith.constant 0 : index
    %c0_49 = arith.constant 0 : index
    %110 = vector.load %arg14[%c0_48, %c0_49] : memref<32x128xf32, #tpu.memory_space<vmem>>, vector<32x128xf32>
    tpu.vector_store %arg14[%c0_48, %c0_49], %109 {strides = array<i32>} : memref<32x128xf32, #tpu.memory_space<vmem>>, vector<32x128xf32>,
    return
  }
  func.func @transform_0(%arg0: i32) -> (i32, i32) {
    %c0_i32 = arith.constant 0 : i32
    %c0_i32_0 = arith.constant 0 : i32
    return %arg0, %c0_i32 : i32, i32
  }
  func.func @transform_1(%arg0: i32) -> (i32, i32) {
    %c0_i32 = arith.constant 0 : i32
    %c0_i32_0 = arith.constant 0 : i32
    %c0_i32_1 = arith.constant 0 : i32
    return %c0_i32, %c0_i32_0 : i32, i32
  }
  func.func @transform_2(%arg0: i32) -> (i32, i32) {
    %c0_i32 = arith.constant 0 : i32
    %c0_i32_0 = arith.constant 0 : i32
    %c0_i32_1 = arith.constant 0 : i32
    return %c0_i32, %c0_i32_0 : i32, i32
  }
  func.func @transform_3(%arg0: i32) -> (i32, i32) {
    %c0_i32 = arith.constant 0 : i32
    %c0_i32_0 = arith.constant 0 : i32
    %c0_i32_1 = arith.constant 0 : i32
    return %c0_i32, %c0_i32_0 : i32, i32
  }
  func.func @transform_4(%arg0: i32) -> (i32, i32) {
    %c0_i32 = arith.constant 0 : i32
    %c0_i32_0 = arith.constant 0 : i32
    %c0_i32_1 = arith.constant 0 : i32
    return %c0_i32, %c0_i32_0 : i32, i32
  }
  func.func @transform_5(%arg0: i32) -> (i32, i32) {
    %c0_i32 = arith.constant 0 : i32
    %c0_i32_0 = arith.constant 0 : i32
    %c0_i32_1 = arith.constant 0 : i32
    return %c0_i32, %c0_i32_0 : i32, i32
  }
  func.func @transform_6(%arg0: i32) -> (i32, i32) {
    %c0_i32 = arith.constant 0 : i32
    %c0_i32_0 = arith.constant 0 : i32
    %c0_i32_1 = arith.constant 0 : i32
    return %c0_i32, %c0_i32_0 : i32, i32
  }
  func.func @transform_7(%arg0: i32) -> (i32, i32) {
    %c0_i32 = arith.constant 0 : i32
    %c0_i32_0 = arith.constant 0 : i32
    %c0_i32_1 = arith.constant 0 : i32
    return %c0_i32, %c0_i32_0 : i32, i32
  }
  func.func @transform_8(%arg0: i32) -> (i32, i32) {
    %c0_i32 = arith.constant 0 : i32
    %c0_i32_0 = arith.constant 0 : i32
    %c0_i32_1 = arith.constant 0 : i32
    return %c0_i32, %c0_i32_0 : i32, i32
  }
  func.func @transform_9(%arg0: i32) -> (i32, i32) {
    %c0_i32 = arith.constant 0 : i32
    %c0_i32_0 = arith.constant 0 : i32
    %c0_i32_1 = arith.constant 0 : i32
    return %c0_i32, %c0_i32_0 : i32, i32
  }
  func.func @transform_10(%arg0: i32) -> (i32, i32) {
    %c0_i32 = arith.constant 0 : i32
    %c0_i32_0 = arith.constant 0 : i32
    %c0_i32_1 = arith.constant 0 : i32
    return %c0_i32, %c0_i32_0 : i32, i32
  }
  func.func @transform_11(%arg0: i32) -> (i32, i32) {
    %c0_i32 = arith.constant 0 : i32
    %c0_i32_0 = arith.constant 0 : i32
    %c0_i32_1 = arith.constant 0 : i32
    return %c0_i32, %c0_i32_0 : i32, i32
  }
  func.func @transform_12(%arg0: i32) -> (i32, i32) {
    %c0_i32 = arith.constant 0 : i32
    %c0_i32_0 = arith.constant 0 : i32
    %c0_i32_1 = arith.constant 0 : i32
    return %c0_i32, %c0_i32_0 : i32, i32
  }
  func.func @transform_13(%arg0: i32) -> (i32, i32) {
    %c0_i32 = arith.constant 0 : i32
    %c0_i32_0 = arith.constant 0 : i32
    return %arg0, %c0_i32 : i32, i32
  }
}

module attributes {stable_mosaic.version = 11 : i64} {
  func.func @_mlp_kernel(%arg0: i32, %arg1: memref<32x128xf32, #tpu.memory_space<vmem>>, %arg2: memref<1x128xf32, #tpu.memory_space<vmem>>, %arg3: memref<1x128xf32, #tpu.memory_space<vmem>>, %arg4: memref<128x128xbf16, #tpu.memory_space<vmem>>, %arg5: memref<1x128xf32, #tpu.memory_space<vmem>>, %arg6: memref<1x128xf32, #tpu.memory_space<vmem>>, %arg7: memref<1x128xf32, #tpu.memory_space<vmem>>, %arg8: memref<128x128xbf16, #tpu.memory_space<vmem>>, %arg9: memref<1x128xf32, #tpu.memory_space<vmem>>, %arg10: memref<1x128xf32, #tpu.memory_space<vmem>>, %arg11: memref<1x128xf32, #tpu.memory_space<vmem>>, %arg12: memref<128x128xbf16, #tpu.memory_space<vmem>>, %arg13: memref<1x128xf32, #tpu.memory_space<vmem>>, %arg14: memref<32x128xf32, #tpu.memory_space<vmem>>) attributes {dimension_semantics = [#tpu.dimension_semantics<parallel>], iteration_bounds = array<i64: 2>, scalar_prefetch = 0 : i64, scratch_operands = 0 : i64, tpu.core_type = #tpu.core_type<tc>, window_params = [{transform_indices = @transform_0, window_bounds = array<i64: 32, 128>}, {pipeline_mode = #tpu.pipeline_mode<synchronous>, transform_indices = @transform_1, window_bounds = array<i64: 1, 128>}, {pipeline_mode = #tpu.pipeline_mode<synchronous>, transform_indices = @transform_2, window_bounds = array<i64: 1, 128>}, {pipeline_mode = #tpu.pipeline_mode<synchronous>, transform_indices = @transform_3, window_bounds = array<i64: 128, 128>}, {pipeline_mode = #tpu.pipeline_mode<synchronous>, transform_indices = @transform_4, window_bounds = array<i64: 1, 128>}, {pipeline_mode = #tpu.pipeline_mode<synchronous>, transform_indices = @transform_5, window_bounds = array<i64: 1, 128>}, {pipeline_mode = #tpu.pipeline_mode<synchronous>, transform_indices = @transform_6, window_bounds = array<i64: 1, 128>}, {pipeline_mode = #tpu.pipeline_mode<synchronous>, transform_indices = @transform_7, window_bounds = array<i64: 128, 128>}, {pipeline_mode = #tpu.pipeline_mode<synchronous>, transform_indices = @transform_8, window_bounds = array<i64: 1, 128>}, {pipeline_mode = #tpu.pipeline_mode<synchronous>, transform_indices = @transform_9, window_bounds = array<i64: 1, 128>}, {pipeline_mode = #tpu.pipeline_mode<synchronous>, transform_indices = @transform_10, window_bounds = array<i64: 1, 128>}, {pipeline_mode = #tpu.pipeline_mode<synchronous>, transform_indices = @transform_11, window_bounds = array<i64: 128, 128>}, {pipeline_mode = #tpu.pipeline_mode<synchronous>, transform_indices = @transform_12, window_bounds = array<i64: 1, 128>}, {transform_indices = @transform_13, window_bounds = array<i64: 32, 128>}]} {
    %c0 = arith.constant 0 : index
    %c0_0 = arith.constant 0 : index
    %0 = vector.load %arg1[%c0, %c0_0] : memref<32x128xf32, #tpu.memory_space<vmem>>, vector<32x128xf32>
    %c0_1 = arith.constant 0 : index
    %c0_2 = arith.constant 0 : index
    %1 = vector.load %arg2[%c0_1, %c0_2] : memref<1x128xf32, #tpu.memory_space<vmem>>, vector<1x128xf32>
    %c0_3 = arith.constant 0 : index
    %c0_4 = arith.constant 0 : index
    %2 = vector.load %arg3[%c0_3, %c0_4] : memref<1x128xf32, #tpu.memory_space<vmem>>, vector<1x128xf32>
    %cst = arith.constant dense<0.000000e+00> : vector<32xf32>
    %3 = vector.multi_reduction <add>, %0, %cst [1] : vector<32x128xf32> to vector<32xf32>
    %4 = vector.shape_cast %3 : vector<32xf32> to vector<32x1xf32>
    %cst_5 = arith.constant 6.250000e-02 : f32
    %5 = vector.broadcast %cst_5 : f32 to vector<32x1xf32>
    %6 = arith.mulf %4, %5 : vector<32x1xf32>
    %7 = vector.broadcast %6 : vector<32x1xf32> to vector<32x128xf32>
    %8 = arith.subf %0, %7 : vector<32x128xf32>
    %9 = tpu.iota {dimensions = array<i32: 1>} : vector<1x128xi32>
    %c16_i32 = arith.constant 16 : i32
    %10 = vector.broadcast %c16_i32 : i32 to vector<1x128xi32>
    %11 = arith.cmpi slt, %9, %10 : vector<1x128xi32>
    %cst_6 = arith.constant 0.000000e+00 : f32
    %12 = vector.shape_cast %11 : vector<1x128xi1> to vector<1x128xi1>
    %13 = vector.broadcast %12 : vector<1x128xi1> to vector<32x128xi1>
    %14 = vector.broadcast %cst_6 : f32 to vector<32x128xf32>
    %15 = arith.select %13, %8, %14 : vector<32x128xi1>, vector<32x128xf32>
    %16 = arith.mulf %15, %15 : vector<32x128xf32>
    %cst_7 = arith.constant dense<0.000000e+00> : vector<32xf32>
    %17 = vector.multi_reduction <add>, %16, %cst_7 [1] : vector<32x128xf32> to vector<32xf32>
    %18 = vector.shape_cast %17 : vector<32xf32> to vector<32x1xf32>
    %cst_8 = arith.constant 6.250000e-02 : f32
    %19 = vector.broadcast %cst_8 : f32 to vector<32x1xf32>
    %20 = arith.mulf %18, %19 : vector<32x1xf32>
    %cst_9 = arith.constant 9.99999974E-6 : f32
    %21 = vector.broadcast %cst_9 : f32 to vector<32x1xf32>
    %22 = arith.addf %20, %21 : vector<32x1xf32>
    %23 = math.rsqrt %22 : vector<32x1xf32>
    %24 = vector.broadcast %23 : vector<32x1xf32> to vector<32x128xf32>
    %25 = arith.mulf %15, %24 : vector<32x128xf32>
    %26 = vector.broadcast %1 : vector<1x128xf32> to vector<32x128xf32>
    %27 = arith.mulf %25, %26 : vector<32x128xf32>
    %28 = vector.broadcast %2 : vector<1x128xf32> to vector<32x128xf32>
    %29 = arith.addf %27, %28 : vector<32x128xf32>
    %c0_10 = arith.constant 0 : index
    %c0_11 = arith.constant 0 : index
    %30 = vector.load %arg4[%c0_10, %c0_11] : memref<128x128xbf16, #tpu.memory_space<vmem>>, vector<128x128xbf16>
    %c0_12 = arith.constant 0 : index
    %c0_13 = arith.constant 0 : index
    %31 = vector.load %arg5[%c0_12, %c0_13] : memref<1x128xf32, #tpu.memory_space<vmem>>, vector<1x128xf32>
    %32 = arith.truncf %29 : vector<32x128xf32> to vector<32x128xbf16>
    %cst_14 = arith.constant dense<0.000000e+00> : vector<32x128xf32>
    %33 = tpu.matmul %32, %30, %cst_14 {dimension_numbers = #tpu.dot_dimension_numbers<[1], [0], [0], [1], [0, 0, 1, 1], [], []>} : vector<32x128xbf16>, vector<128x128xbf16>, vector<32x128xf32> -> vector<32x128xf32>
    %34 = vector.broadcast %31 : vector<1x128xf32> to vector<32x128xf32>
    %35 = arith.addf %33, %34 : vector<32x128xf32>
    %cst_15 = arith.constant 0.000000e+00 : f32
    %36 = vector.broadcast %cst_15 : f32 to vector<32x128xf32>
    %37 = arith.maximumf %35, %36 : vector<32x128xf32>
    %c0_16 = arith.constant 0 : index
    %c0_17 = arith.constant 0 : index
    %38 = vector.load %arg6[%c0_16, %c0_17] : memref<1x128xf32, #tpu.memory_space<vmem>>, vector<1x128xf32>
    %c0_18 = arith.constant 0 : index
    %c0_19 = arith.constant 0 : index
    %39 = vector.load %arg7[%c0_18, %c0_19] : memref<1x128xf32, #tpu.memory_space<vmem>>, vector<1x128xf32>
    %cst_20 = arith.constant dense<0.000000e+00> : vector<32xf32>
    %40 = vector.multi_reduction <add>, %37, %cst_20 [1] : vector<32x128xf32> to vector<32xf32>
    %41 = vector.shape_cast %40 : vector<32xf32> to vector<32x1xf32>
    %cst_21 = arith.constant 3.125000e-02 : f32
    %42 = vector.broadcast %cst_21 : f32 to vector<32x1xf32>
    %43 = arith.mulf %41, %42 : vector<32x1xf32>
    %44 = vector.broadcast %43 : vector<32x1xf32> to vector<32x128xf32>
    %45 = arith.subf %37, %44 : vector<32x128xf32>
    %46 = tpu.iota {dimensions = array<i32: 1>} : vector<1x128xi32>
    %c32_i32 = arith.constant 32 : i32
    %47 = vector.broadcast %c32_i32 : i32 to vector<1x128xi32>
    %48 = arith.cmpi slt, %46, %47 : vector<1x128xi32>
    %cst_22 = arith.constant 0.000000e+00 : f32
    %49 = vector.shape_cast %48 : vector<1x128xi1> to vector<1x128xi1>
    %50 = vector.broadcast %49 : vector<1x128xi1> to vector<32x128xi1>
    %51 = vector.broadcast %cst_22 : f32 to vector<32x128xf32>
    %52 = arith.select %50, %45, %51 : vector<32x128xi1>, vector<32x128xf32>
    %53 = arith.mulf %52, %52 : vector<32x128xf32>
    %cst_23 = arith.constant dense<0.000000e+00> : vector<32xf32>
    %54 = vector.multi_reduction <add>, %53, %cst_23 [1] : vector<32x128xf32> to vector<32xf32>
    %55 = vector.shape_cast %54 : vector<32xf32> to vector<32x1xf32>
    %cst_24 = arith.constant 3.125000e-02 : f32
    %56 = vector.broadcast %cst_24 : f32 to vector<32x1xf32>
    %57 = arith.mulf %55, %56 : vector<32x1xf32>
    %cst_25 = arith.constant 9.99999974E-6 : f32
    %58 = vector.broadcast %cst_25 : f32 to vector<32x1xf32>
    %59 = arith.addf %57, %58 : vector<32x1xf32>
    %60 = math.rsqrt %59 : vector<32x1xf32>
    %61 = vector.broadcast %60 : vector<32x1xf32> to vector<32x128xf32>
    %62 = arith.mulf %52, %61 : vector<32x128xf32>
    %63 = vector.broadcast %38 : vector<1x128xf32> to vector<32x128xf32>
    %64 = arith.mulf %62, %63 : vector<32x128xf32>
    %65 = vector.broadcast %39 : vector<1x128xf32> to vector<32x128xf32>
    %66 = arith.addf %64, %65 : vector<32x128xf32>
    %c0_26 = arith.constant 0 : index
    %c0_27 = arith.constant 0 : index
    %67 = vector.load %arg8[%c0_26, %c0_27] : memref<128x128xbf16, #tpu.memory_space<vmem>>, vector<128x128xbf16>
    %c0_28 = arith.constant 0 : index
    %c0_29 = arith.constant 0 : index
    %68 = vector.load %arg9[%c0_28, %c0_29] : memref<1x128xf32, #tpu.memory_space<vmem>>, vector<1x128xf32>
    %69 = arith.truncf %66 : vector<32x128xf32> to vector<32x128xbf16>
    %cst_30 = arith.constant dense<0.000000e+00> : vector<32x128xf32>
    %70 = tpu.matmul %69, %67, %cst_30 {dimension_numbers = #tpu.dot_dimension_numbers<[1], [0], [0], [1], [0, 0, 1, 1], [], []>} : vector<32x128xbf16>, vector<128x128xbf16>, vector<32x128xf32> -> vector<32x128xf32>
    %71 = vector.broadcast %68 : vector<1x128xf32> to vector<32x128xf32>
    %72 = arith.addf %70, %71 : vector<32x128xf32>
    %cst_31 = arith.constant 0.000000e+00 : f32
    %73 = vector.broadcast %cst_31 : f32 to vector<32x128xf32>
    %74 = arith.maximumf %72, %73 : vector<32x128xf32>
    %c0_32 = arith.constant 0 : index
    %c0_33 = arith.constant 0 : index
    %75 = vector.load %arg10[%c0_32, %c0_33] : memref<1x128xf32, #tpu.memory_space<vmem>>, vector<1x128xf32>
    %c0_34 = arith.constant 0 : index
    %c0_35 = arith.constant 0 : index
    %76 = vector.load %arg11[%c0_34, %c0_35] : memref<1x128xf32, #tpu.memory_space<vmem>>, vector<1x128xf32>
    %cst_36 = arith.constant dense<0.000000e+00> : vector<32xf32>
    %77 = vector.multi_reduction <add>, %74, %cst_36 [1] : vector<32x128xf32> to vector<32xf32>
    %78 = vector.shape_cast %77 : vector<32xf32> to vector<32x1xf32>
    %cst_37 = arith.constant 3.125000e-02 : f32
    %79 = vector.broadcast %cst_37 : f32 to vector<32x1xf32>
    %80 = arith.mulf %78, %79 : vector<32x1xf32>
    %81 = vector.broadcast %80 : vector<32x1xf32> to vector<32x128xf32>
    %82 = arith.subf %74, %81 : vector<32x128xf32>
    %83 = tpu.iota {dimensions = array<i32: 1>} : vector<1x128xi32>
    %c32_i32_38 = arith.constant 32 : i32
    %84 = vector.broadcast %c32_i32_38 : i32 to vector<1x128xi32>
    %85 = arith.cmpi slt, %83, %84 : vector<1x128xi32>
    %cst_39 = arith.constant 0.000000e+00 : f32
    %86 = vector.shape_cast %85 : vector<1x128xi1> to vector<1x128xi1>
    %87 = vector.broadcast %86 : vector<1x128xi1> to vector<32x128xi1>
    %88 = vector.broadcast %cst_39 : f32 to vector<32x128xf32>
    %89 = arith.select %87, %82, %88 : vector<32x128xi1>, vector<32x128xf32>
    %90 = arith.mulf %89, %89 : vector<32x128xf32>
    %cst_40 = arith.constant dense<0.000000e+00> : vector<32xf32>
    %91 = vector.multi_reduction <add>, %90, %cst_40 [1] : vector<32x128xf32> to vector<32xf32>
    %92 = vector.shape_cast %91 : vector<32xf32> to vector<32x1xf32>
    %cst_41 = arith.constant 3.125000e-02 : f32
    %93 = vector.broadcast %cst_41 : f32 to vector<32x1xf32>
    %94 = arith.mulf %92, %93 : vector<32x1xf32>
    %cst_42 = arith.constant 9.99999974E-6 : f32
    %95 = vector.broadcast %cst_42 : f32 to vector<32x1xf32>
    %96 = arith.addf %94, %95 : vector<32x1xf32>
    %97 = math.rsqrt %96 : vector<32x1xf32>
    %98 = vector.broadcast %97 : vector<32x1xf32> to vector<32x128xf32>
    %99 = arith.mulf %89, %98 : vector<32x128xf32>
    %100 = vector.broadcast %75 : vector<1x128xf32> to vector<32x128xf32>
    %101 = arith.mulf %99, %100 : vector<32x128xf32>
    %102 = vector.broadcast %76 : vector<1x128xf32> to vector<32x128xf32>
    %103 = arith.addf %101, %102 : vector<32x128xf32>
    %c0_43 = arith.constant 0 : index
    %c0_44 = arith.constant 0 : index
    %104 = vector.load %arg12[%c0_43, %c0_44] : memref<128x128xbf16, #tpu.memory_space<vmem>>, vector<128x128xbf16>
    %c0_45 = arith.constant 0 : index
    %c0_46 = arith.constant 0 : index
    %105 = vector.load %arg13[%c0_45, %c0_46] : memref<1x128xf32, #tpu.memory_space<vmem>>, vector<1x128xf32>
    %106 = arith.truncf %103 : vector<32x128xf32> to vector<32x128xbf16>
    %cst_47 = arith.constant dense<0.000000e+00> : vector<32x128xf32>
    %107 = tpu.matmul %106, %104, %cst_47 {dimension_numbers = #tpu.dot_dimension_numbers<[1], [0], [0], [1], [0, 0, 1, 1], [], []>} : vector<32x128xbf16>, vector<128x128xbf16>, vector<32x128xf32> -> vector<32x128xf32>
    %108 = vector.broadcast %105 : vector<1x128xf32> to vector<32x128xf32>
    %109 = arith.addf %107, %108 : vector<32x128xf32>
    %c0_48 = arith.constant 0 : index
    %c0_49 = arith.constant 0 : index
    %110 = vector.load %arg14[%c0_48, %c0_49] : memref<32x128xf32, #tpu.memory_space<vmem>>, vector<32x128xf32>
    tpu.vector_store %arg14[%c0_48, %c0_49], %109 {strides = array<i32>} : memref<32x128xf32, #tpu.memory_space<vmem>>, vector<32x128xf32>,
    return
  }
  func.func @transform_0(%arg0: i32) -> (i32, i32) {
    %c0_i32 = arith.constant 0 : i32
    %c0_i32_0 = arith.constant 0 : i32
    return %arg0, %c0_i32 : i32, i32
  }
  func.func @transform_1(%arg0: i32) -> (i32, i32) {
    %c0_i32 = arith.constant 0 : i32
    %c0_i32_0 = arith.constant 0 : i32
    %c0_i32_1 = arith.constant 0 : i32
    return %c0_i32, %c0_i32_0 : i32, i32
  }
  func.func @transform_2(%arg0: i32) -> (i32, i32) {
    %c0_i32 = arith.constant 0 : i32
    %c0_i32_0 = arith.constant 0 : i32
    %c0_i32_1 = arith.constant 0 : i32
    return %c0_i32, %c0_i32_0 : i32, i32
  }
  func.func @transform_3(%arg0: i32) -> (i32, i32) {
    %c0_i32 = arith.constant 0 : i32
    %c0_i32_0 = arith.constant 0 : i32
    %c0_i32_1 = arith.constant 0 : i32
    return %c0_i32, %c0_i32_0 : i32, i32
  }
  func.func @transform_4(%arg0: i32) -> (i32, i32) {
    %c0_i32 = arith.constant 0 : i32
    %c0_i32_0 = arith.constant 0 : i32
    %c0_i32_1 = arith.constant 0 : i32
    return %c0_i32, %c0_i32_0 : i32, i32
  }
  func.func @transform_5(%arg0: i32) -> (i32, i32) {
    %c0_i32 = arith.constant 0 : i32
    %c0_i32_0 = arith.constant 0 : i32
    %c0_i32_1 = arith.constant 0 : i32
    return %c0_i32, %c0_i32_0 : i32, i32
  }
  func.func @transform_6(%arg0: i32) -> (i32, i32) {
    %c0_i32 = arith.constant 0 : i32
    %c0_i32_0 = arith.constant 0 : i32
    %c0_i32_1 = arith.constant 0 : i32
    return %c0_i32, %c0_i32_0 : i32, i32
  }
  func.func @transform_7(%arg0: i32) -> (i32, i32) {
    %c0_i32 = arith.constant 0 : i32
    %c0_i32_0 = arith.constant 0 : i32
    %c0_i32_1 = arith.constant 0 : i32
    return %c0_i32, %c0_i32_0 : i32, i32
  }
  func.func @transform_8(%arg0: i32) -> (i32, i32) {
    %c0_i32 = arith.constant 0 : i32
    %c0_i32_0 = arith.constant 0 : i32
    %c0_i32_1 = arith.constant 0 : i32
    return %c0_i32, %c0_i32_0 : i32, i32
  }
  func.func @transform_9(%arg0: i32) -> (i32, i32) {
    %c0_i32 = arith.constant 0 : i32
    %c0_i32_0 = arith.constant 0 : i32
    %c0_i32_1 = arith.constant 0 : i32
    return %c0_i32, %c0_i32_0 : i32, i32
  }
  func.func @transform_10(%arg0: i32) -> (i32, i32) {
    %c0_i32 = arith.constant 0 : i32
    %c0_i32_0 = arith.constant 0 : i32
    %c0_i32_1 = arith.constant 0 : i32
    return %c0_i32, %c0_i32_0 : i32, i32
  }
  func.func @transform_11(%arg0: i32) -> (i32, i32) {
    %c0_i32 = arith.constant 0 : i32
    %c0_i32_0 = arith.constant 0 : i32
    %c0_i32_1 = arith.constant 0 : i32
    return %c0_i32, %c0_i32_0 : i32, i32
  }
  func.func @transform_12(%arg0: i32) -> (i32, i32) {
    %c0_i32 = arith.constant 0 : i32
    %c0_i32_0 = arith.constant 0 : i32
    %c0_i32_1 = arith.constant 0 : i32
    return %c0_i32, %c0_i32_0 : i32, i32
  }
  func.func @transform_13(%arg0: i32) -> (i32, i32) {
    %c0_i32 = arith.constant 0 : i32
    %c0_i32_0 = arith.constant 0 : i32
    return %arg0, %c0_i32 : i32, i32
  }
}

</mosaic_0001>

<bundles_post_ra>
// kernel: tpu_custom_call.1
= control target key start
LH: loop header
LB: loop body
LE: loop exit
PB: predicated region body
PF: predicated region fallthrough
CT: control target
= control target key end

     0   :  { %s2108_s0 = inlined_call_operand.hbm [shape: f32[64,128], index: 0, kind: input, shape index: {}]   ;;  %s2109_s1 = inlined_call_operand.hbm [shape: f32[1,128], index: 1, kind: input, shape index: {}]   ;;  %s2110_s2 = inlined_call_operand.vmem [shape: f32[1,128], index: 2, kind: input, shape index: {}]   ;;  %s2111_s3 = inlined_call_operand.hbm [shape: bf16[128,128], index: 3, kind: input, shape index: {}]   ;;  %s2112_s4 = inlined_call_operand.vmem [shape: f32[1,128], index: 4, kind: input, shape index: {}]   ;;  %s2113_s5 = inlined_call_operand.vmem [shape: f32[1,128], index: 5, kind: input, shape index: {}]   ;;  %s2114_s6 = inlined_call_operand.vmem [shape: f32[1,128], index: 6, kind: input, shape index: {}]   ;;  %s2115_s7 = inlined_call_operand.hbm [shape: bf16[128,128], index: 7, kind: input, shape index: {}]   ;;  %s2116_s8 = inlined_call_operand.vmem [shape: f32[1,128], index: 8, kind: input, shape index: {}]   ;;  %s2117_s9 = inlined_call_operand.vmem [shape: f32[1,128], index: 9, kind: input, shape index: {}]   ;;  %s2118_s10 = inlined_call_operand.vmem [shape: f32[1,128], index: 10, kind: input, shape index: {}]   ;;  %s2119_s11 = inlined_call_operand.hbm [shape: bf16[128,128], index: 11, kind: input, shape index: {}]   ;;  %s2120_s12 = inlined_call_operand.vmem [shape: f32[1,128], index: 12, kind: input, shape index: {}]   ;;  %s2121_s13 = inlined_call_operand.hbm [shape: f32[64,128], index: 13, kind: output, shape index: {}]  }
   0x1   :  { %2124 = sst [smem:[#allocation19_spill]] %s2109_s1 }
   0x2   :  { %2125 = sst [smem:[#allocation20_spill]] %s2111_s3 }
   0x3   :  { %2126 = sst [smem:[#allocation21_spill]] %s2115_s7 }
   0x4   :  { %2127 = sst [smem:[#allocation22_spill]] %s2119_s11 }
   0x5   :  { %18 = vsyncpa [#allocation3], 0 }
   0x6   :  { %20 = vsyncpa [#allocation3 + $0x1], 0 }
   0x7   :  { %21 = vsyncpa [#allocation6], 0 }
   0x8   :  { %22 = vsyncpa [#allocation9], 0 }
   0x9   :  { %23 = vsyncpa [#allocation4], 0 }
   0xa   :  { %25 = vsyncpa [#allocation4 + $0x1], 0  ;;  %s1829_s25 = smov 0   ;;  %s1831_s26 = smov 0  }
   0xb   :  { %s1833_s27 = smov 0   ;;  %s1835_s28 = smov 0  }
   0xc LB: > { %2128 = sst [smem:[#allocation16_spill]] %s1743_s27  ;;  %s1850_s29 = sadd.s32 4294967295, %s1747_s28   ;;  %s1747_s28 = sphi %s1835_s28, %s2147_s28   ;;  %s1743_s27 = sphi %s1833_s27, %s2144_s27   ;;  %s1739_s26 = sphi %s1831_s26, %s2146_s26   ;;  %s1735_s25 = sphi %s1829_s25, %s2145_s25  }
   0xd   : > { %s1245_s30 = sadd.s32 4294967294, %s1747_s28   ;;  %p51_p0 = scmp.ne.s32.totalorder %s1739_s26, %s1735_s25 }
   0xe   : > { %p52_p1 = scmp.eq.s32.totalorder %s1850_s29, 0  ;;  %p327_p2 = scmp.eq.s32.totalorder %s1850_s29, 1 }
   0xf   : > { %p333_p3 = scmp.eq.s32.totalorder %s1245_s30, 1  ;;  %p1246_p5 = scmp.ge.s32.totalorder %s1747_s28, 1 }
  0x10   : > { %p1859_p4 = por %p52_p1, %p51_p0  ;;  %p340_p7 = scmp.lt.s32.totalorder %s1747_s28, 3 }
  0x11   : > { %p1864_p6 = por %p333_p3, %p51_p0  ;;  %s2132_s1 = sld [smem:[#allocation19_spill]] }
  0x12   : > { %p1872_p8 = pnand %p1246_p5, %p340_p7  ;;  %s1749_s20 = smov [#allocation5]  }
  0x13   : > { %s2130_s15 = scalar_select %p1864_p6, 1, 0 }
  0x14   : > { %p1417_p10 = pneg %p1872_p8  ;;  %s354_s21 = sshll.u32 %s1749_s20, 4  ;;  %s355_s21 = int_to_ptr.vmem [resolvable:$true] %s354_s21 }
  0x15   : > { %2131 = sst [smem:[#allocation17_spill]] %s2130_s15  ;;  %s1750_s16 = smov [#allocation8]  }
  0x16   : > { %p1881_p11 = pnand %p1417_p10, %p52_p1  ;;  %s2135_s7 = sld [smem:[#allocation21_spill]] }
  0x17   : > { %s352_s18 = sshll.u32 %s2132_s1, 4  ;;  %s391_s17 = sshll.u32 %s1750_s16, 4  ;;  %s353_s18 = int_to_ptr.hbm [resolvable:$true] %s352_s18  ;;  %s392_s17 = int_to_ptr.vmem [resolvable:$true] %s391_s17 }
  0x18   : > { %1420 = dma.hbm_to_vmem [thread:$0]  (!%p1881_p11), %s353_s18, 16, %s355_s21, [#allocation6]  }
  0x19   : > { %s2136_s3 = sld [smem:[#allocation20_spill]]  ;;  %s1751_s23 = smov 64  }
  0x1a   : > { %s1752_s24 = smov 4   ;;  %s2137_s11 = sld [smem:[#allocation22_spill]] }
  0x1b   : > { %s1753_s1 = smov [#allocation7]   ;;  %s1754_s20 = smov [#allocation10]  }
  0x1c   : > { %s389_s30 = sshll.u32 %s2135_s7, 4  ;;  %s368_s16 = sshll.u32 %s1753_s1, 4  ;;  %s390_s30 = int_to_ptr.hbm [resolvable:$true] %s389_s30  ;;  %s369_s16 = int_to_ptr.vmem [resolvable:$true] %s368_s16 }
  0x1d   : > { %1426 = dma.hbm_to_vmem [thread:$0]  (!%p1881_p11), %s390_s30, 1024, %s392_s17, [#allocation9], %s1751_s23, %s1751_s23, %s1752_s24  }
  0x1e   : > { %s1903_s30 = sadd.s32 1, %s1747_s28   ;;  %s38_s7 = sadd.s32 1, %s1743_s27 }
  0x1f   : > { %s366_s15 = sshll.u32 %s2136_s3, 4  ;;  %s414_s3 = sshll.u32 %s1754_s20, 4  ;;  %s367_s15 = int_to_ptr.hbm [resolvable:$true] %s366_s15  ;;  %s415_s3 = int_to_ptr.vmem [resolvable:$true] %s414_s3 }
  0x20   : > { %s412_s21 = sshll.u32 %s2137_s11, 4  ;;  %s35_s17 = ssub.s32 %s1747_s28, %s1903_s30  ;;  %s413_s21 = int_to_ptr.hbm [resolvable:$true] %s412_s21 }
  0x21   : > { %1423 = dma.hbm_to_vmem [thread:$0]  (!%p1881_p11), %s367_s15, 1024, %s369_s16, [#allocation6], %s1751_s23, %s1751_s23, %s1752_s24  }
  0x22   : > { %1429 = dma.hbm_to_vmem [thread:$0]  (!%p1881_p11), %s413_s21, 1024, %s415_s3, [#allocation9], %s1751_s23, %s1751_s23, %s1752_s24  }
  0x23   : > { %p45_p12 = scmp.ne.s32.totalorder %s1743_s27, %s1739_s26  ;;  %p36_p13 = scmp.eq.s32.totalorder %s35_s17, 0 }
  0x24   : > { %p46_p0 = scmp.eq.s32.totalorder %s1747_s28, 0  ;;  %p1442_p5 = scmp.lt.s32.totalorder %s1747_s28, 2 }
  0x25   : > { %p1913_p3 = por %p327_p2, %p45_p12  ;;  %s431_s1 = sand.u32 1, %s1743_s27  }
  0x26   : > { %s1919_s15 = scalar_select %p36_p13, %s1743_s27, %s38_s7  }
  0x27   : > { %p47_p7 = por %p46_p0, %p45_p12  ;;  %s1252_s22 = sshll.u32 %s431_s1, 5 }
  0x28   : > { %2139 = sst [smem:[#allocation18_spill]] %s1919_s15  ;;  %s1363_s3 = sshll.u32 %s1747_s28, 5 }
  0x29   : > { %s440_s21 = scalar_lea.hbm %s2108_s0, %s1363_s3  ;;  %s435_s16 = scalar_lea.vmem [#allocation2], %s1252_s22 }
  0x2a   : > { %s443_s20 = sshll.u32 %s435_s16, 4  ;;  %s441_s17 = sshll.u32 %s440_s21, 4  ;;  %s444_s20 = int_to_ptr.vmem [resolvable:$true] %s443_s20  ;;  %s442_s17 = int_to_ptr.hbm [resolvable:$true] %s441_s17 }
  0x2b   : > { %p1926_p2 = pnand %p1442_p5, %p47_p7  ;;  %s432_s7 = scalar_lea.sflag [#allocation3], %s431_s1 }
  0x2c   : > { %s1643_s15 = sshra.s32 %s442_s17, 4  ;;  %s1650_s23 = scalar_lea.hbm %s2108_s0, 64  ;;  %s1644_s15 = int_to_ptr.hbm [resolvable:$true] %s1643_s15 }
  0x2d   : > { %s1645_s27 = scalar_lea.hbm %s1644_s15, 32  ;;  %p1647_p11 = pneg %p1926_p2 }
  0x2e   : > { %p1646_p10 = scmp.ne.s32.totalorder %s1644_s15, %s1645_s27  ;;  %p1651_p0 = scmp.lt.s32.totalorder %s1644_s15, %s2108_s0 }
  0x2f   : > { %p1652_p5 = scmp.lt.s32.totalorder %s1650_s23, %s1645_s27 }
  0x30   : > { %p1648_p12 = pnand %p1647_p11, %p1646_p10 }
  0x31   : > { %p1653_p7 = por %p1652_p5, %p1651_p0 }
  0x32   : > { %p1649_p13 = pneg %p1648_p12 }
  0x34   : > { %p1654_p9 = pnand %p1653_p7, %p1649_p13 }
  0x36   : > { %1657 = shalt.err (!%p1654_p9)
}
  0x37   : > { %s1755_s1 = smov 128   ;;  %s1756_s16 = smov 8  }
  0x38   : > { %1433 = dma.hbm_to_vmem [thread:$0]  (!%p1926_p2), %s442_s17, 512, %s444_s20, %s432_s7, %s1755_s1, %s1755_s1, %s1756_s16  }
  0x39   : > { %455 = sbr.rel (%p1872_p8) target bundleno = 1322 (0x52a), region = 72  ;;  %s1943_s3 = sand.u32 (!%p1872_p8), 1, %s1739_s26  }
  0x3a   : > { %s1256_s15 = sshll.u32 (!%p1872_p8), %s1943_s3, 5  ;;  %s458_s27 = scalar_lea.sflag (!%p1872_p8), [#allocation3], %s1943_s3 }
  0x3b   : > { %s461_s22 = scalar_lea.vmem (!%p1872_p8), [#allocation2], %s1256_s15 }
  0x3e   : > { %1718 = dma.done.wait (%p1859_p4), %s458_s27, 512  }
  0x3f   : > { %1720 = vsyncadd (%p1859_p4), %s458_s27, 4294966784 }
  0x40   : > { %1722 = dma.done.wait (%p52_p1), [#allocation6], 1040  }
  0x41   : > { %1724 = vsyncadd (%p52_p1), [#allocation6], 4294966256 }
  0x42   : > { %1726 = dma.done.wait (%p52_p1), [#allocation9], 2048  }
  0x43   : > { %1728 = vsyncadd (%p52_p1), [#allocation9], 4294965248  ;;  %v529_v0 = vld [vmem:[%s461_s22 + $0x10] sm:$0xff]  ;;  %v527_v1 = vld [vmem:[%s461_s22] sm:$0xff]  ;;  %v549_v4 = vlaneseq  ;;  %s524_s20 = scalar_lea.vmem [#allocation11], %s1256_s15  ;;  %s1388_s17 = sshll.u32 %s1850_s29, 5 }
  0x44   : > { %537 = vadd.xlane.f32.xlu1 %v529_v0  ;;  %533 = vadd.xlane.f32.xlu0 %v527_v1  ;;  %v530_v2 = vld [vmem:[%s461_s22 + $0x18] sm:$0xff]  ;;  %v528_v3 = vld [vmem:[%s461_s22 + $0x8] sm:$0xff]  ;;  %s1130_s24 = scalar_lea.hbm %s2121_s13, %s1388_s17  ;;  %s1131_s21 = sshll.u32 %s524_s20, 4  ;;  %s1132_s21 = int_to_ptr.vmem [resolvable:$true] %s1131_s21 }
  0x45   : > { %v1961_v5 = vand.u32 127, %v549_v4  ;;  %v1371_v26 = vld [vmem:[#allocation7 + $0x38] sm:$0xff]  ;;  %v1370_v27 = vld [vmem:[#allocation7 + $0x30] sm:$0xff]  ;;  %v1369_v28 = vld [vmem:[#allocation7 + $0x28] sm:$0xff]  ;;  %s1133_s1 = sshll.u32 %s1130_s24, 4  ;;  %s1119_s15 = scalar_lea.sflag [#allocation4], %s1943_s3  ;;  %s1134_s1 = int_to_ptr.hbm [resolvable:$true] %s1133_s1 }
  0x46   : > { %706 = vmatpush.bf16.msra.mxu0 %v1371_v26  ;;  %1389 = vmatpush.bf16.msra.mxu3 %v1371_v26  ;;  %v1368_v29 = vld [vmem:[#allocation7 + $0x20] sm:$0xff]  ;;  %v1367_v30 = vld [vmem:[#allocation7 + $0x18] sm:$0xff]  ;;  %v1366_v31 = vld [vmem:[#allocation7 + $0x10] sm:$0xff]  ;;  %s1687_s16 = sshra.s32 %s1134_s1, 4  ;;  %s1693_s11 = scalar_lea.hbm %s2121_s13, 64  ;;  %s1688_s16 = int_to_ptr.hbm [resolvable:$true] %s1687_s16 }
  0x47   : > { %vm551_vm0 = vcmp.lt.s32.totalorder %v1961_v5, 16  ;;  %v1365_v32 = vld [vmem:[#allocation7 + $0x8] sm:$0xff]  ;;  %v1364_v37 = vld [vmem:[#allocation7] sm:$0xff]  ;;  %vm747_vm13 = vcmp.lt.s32.totalorder %v1961_v5, 32  ;;  %s1689_s27 = scalar_lea.hbm %s1688_s16, 32  ;;  %p1694_p9 = scmp.lt.s32.totalorder %s1688_s16, %s2121_s13 }
  0x48   : > { %p1690_p1 = scmp.ne.s32.totalorder %s1688_s16, %s1689_s27  ;;  %p1695_p2 = scmp.lt.s32.totalorder %s1693_s11, %s1689_s27 }
  0x4a   : > { %707 = vmatpush.bf16.msra.mxu0 %v1370_v27  ;;  %1390 = vmatpush.bf16.msra.mxu3 %v1370_v27  ;;  %p1691_p4 = pnand %p1690_p1, %p1913_p3  ;;  %p1696_p10 = por %p1695_p2, %p1694_p9 }
  0x4c   : > { %539 = vadd.xlane.f32.xlu1 %v530_v2  ;;  %535 = vadd.xlane.f32.xlu0 %v528_v3  ;;  %p1692_p8 = pneg %p1691_p4 }
  0x4e   : > { %708 = vmatpush.bf16.msra.mxu0 %v1369_v28  ;;  %1391 = vmatpush.bf16.msra.mxu3 %v1369_v28  ;;  %p1697_p11 = pnand %p1696_p10, %p1692_p8 }
  0x52   : > { %709 = vmatpush.bf16.msra.mxu0 %v1368_v29  ;;  %1392 = vmatpush.bf16.msra.mxu3 %v1368_v29  ;;  %v1492_v29 = vld [vmem:[%s2112_s4] ss:$0 sm:$0xff] }
  0x56   : > { %710 = vmatpush.bf16.msra.mxu0 %v1367_v30  ;;  %1393 = vmatpush.bf16.msra.mxu3 %v1367_v30 }
  0x5a   : > { %711 = vmatpush.bf16.msra.mxu0 %v1366_v31  ;;  %1394 = vmatpush.bf16.msra.mxu3 %v1366_v31 }
  0x5e   : > { %712 = vmatpush.bf16.msra.mxu0 %v1365_v32  ;;  %1395 = vmatpush.bf16.msra.mxu3 %v1365_v32 }
  0x62   : > { %713 = vmatpush.bf16.msra.mxu0 %v1364_v37  ;;  %1396 = vmatpush.bf16.msra.mxu3 %v1364_v37 }
  0xb7   : > { %v538_v6 = vpop.xlane.xlu1 %537  ;;  %v534_v7 = vpop.xlane.xlu0 %533 }
  0xb8   : > { %v543_v8 = vmul.f32 0.0625, %v538_v6  ;;  %v541_v9 = vmul.f32 0.0625, %v534_v7  ;;  %v1490_v7 = vld [vmem:[#allocation5] ss:$0 sm:$0xff] }
  0xba   : > { %v547_v10 = vsub.f32 %v529_v0, %v543_v8  ;;  %v545_v11 = vsub.f32 %v527_v1, %v541_v9 }
  0xbc   : > { %v1966_v12 = vsel %vm551_vm0, %v547_v10, 0.0  ;;  %v1970_v13 = vsel %vm551_vm0, %v545_v11, 0.0 }
  0xbd   : > { %v560_v14 = vmul.f32 %v1966_v12, %v1966_v12  ;;  %v558_v15 = vmul.f32 %v1970_v13, %v1970_v13 }
  0xbf   : > { %v540_v16 = vpop.xlane.xlu1 %539  ;;  %566 = vadd.xlane.f32.xlu0 %v560_v14  ;;  %562 = vadd.xlane.f32.xlu2 %v558_v15  ;;  %v536_v17 = vpop.xlane.xlu0 %535 }
  0xc0   : > { %v544_v18 = vmul.f32 0.0625, %v540_v16  ;;  %v542_v19 = vmul.f32 0.0625, %v536_v17  ;;  %v1491_v16 = vld [vmem:[%s2110_s2] ss:$0 sm:$0xff] }
  0xc2   : > { %v548_v20 = vsub.f32 %v530_v2, %v544_v18  ;;  %v546_v21 = vsub.f32 %v528_v3, %v542_v19 }
  0xc4   : > { %v1978_v22 = vsel %vm551_vm0, %v548_v20, 0.0  ;;  %v1982_v23 = vsel %vm551_vm0, %v546_v21, 0.0 }
  0xc5   : > { %v561_v24 = vmul.f32 %v1978_v22, %v1978_v22  ;;  %v559_v25 = vmul.f32 %v1982_v23, %v1982_v23 }
  0xc7   : > { %568 = vadd.xlane.f32.xlu1 %v561_v24  ;;  %564 = vadd.xlane.f32.xlu2 %v559_v25 }
 0x132   : > { %v563_v33 = vpop.xlane.xlu2 %562  ;;  %v567_v34 = vpop.xlane.xlu0 %566 }
 0x133   : > { %v570_v35 = vmul.f32 0.0625, %v563_v33  ;;  %v572_v36 = vmul.f32 0.0625, %v567_v34 }
 0x135   : > { %v574_v38 = vadd.f32 1e-05, %v570_v35  ;;  %v576_v39 = vadd.f32 1e-05, %v572_v36 }
 0x137   : > { %1499 = vrsqrt.f32 %v574_v38  ;;  %vm604_vm1 = vweird.f32 %v576_v39  ;;  %vm584_vm4 = vweird.f32 %v574_v38 }
 0x138   : > { %1501 = vrsqrt.f32 %v576_v39 }
 0x13a   : > { %v569_v40 = vpop.xlane.xlu1 %568  ;;  %v565_v41 = vpop.xlane.xlu2 %564 }
 0x13b   : > { %v573_v42 = vmul.f32 0.0625, %v569_v40  ;;  %v571_v43 = vmul.f32 0.0625, %v565_v41 }
 0x13d   : > { %v1500_v44 = vpop.eup %1499  ;;  %v577_v45 = vadd.f32 1e-05, %v573_v42  ;;  %v575_v46 = vadd.f32 1e-05, %v571_v43 }
 0x13e   : > { %v1502_v47 = vpop.eup %1501  ;;  %v579_v48 = vmul.f32 %v1500_v44, %v574_v38  ;;  %vm585_vm3 = vweird.f32 %v1500_v44 }
 0x13f   : > { %v599_v49 = vmul.f32 %v1502_v47, %v576_v39  ;;  %1503 = vrsqrt.f32 %v577_v45  ;;  %vm605_vm2 = vweird.f32 %v1502_v47  ;;  %vm586_vm6 = vmor %vm584_vm4, %vm585_vm3  ;;  %vm614_vm7 = vweird.f32 %v577_v45 }
 0x140   : > { %v580_v50 = vmul.f32 %v1500_v44, %v579_v48  ;;  %1505 = vrsqrt.f32 %v575_v46  ;;  %vm606_vm5 = vmor %vm604_vm1, %vm605_vm2  ;;  %vm594_vm11 = vweird.f32 %v575_v46 }
 0x141   : > { %v600_v51 = vmul.f32 %v1502_v47, %v599_v49 }
 0x142   : > { %v581_v52 = vmul.f32 0.5, %v580_v50 }
 0x143   : > { %v601_v53 = vmul.f32 0.5, %v600_v51 }
 0x144   : > { %v582_v54 = vsub.f32 1.5, %v581_v52 }
 0x145   : > { %v1504_v55 = vpop.eup %1503  ;;  %v602_v56 = vsub.f32 1.5, %v601_v53 }
 0x146   : > { %v1506_v57 = vpop.eup %1505  ;;  %v609_v58 = vmul.f32 %v1504_v55, %v577_v45  ;;  %v583_v59 = vmul.f32 %v1500_v44, %v582_v54  ;;  %vm615_vm8 = vweird.f32 %v1504_v55 }
 0x147   : > { %v603_v60 = vmul.f32 %v1502_v47, %v602_v56  ;;  %v589_v61 = vmul.f32 %v1506_v57, %v575_v46  ;;  %vm595_vm9 = vweird.f32 %v1506_v57  ;;  %vm616_vm10 = vmor %vm614_vm7, %vm615_vm8 }
 0x148   : > { %v610_v62 = vmul.f32 %v1504_v55, %v609_v58  ;;  %v587_v3 = vsel %vm586_vm6, %v1500_v44, %v583_v59  ;;  %vm596_vm12 = vmor %vm594_vm11, %vm595_vm9 }
 0x149   : > { %v590_v63 = vmul.f32 %v1506_v57, %v589_v61  ;;  %v607_v1 = vsel %vm606_vm5, %v1502_v47, %v603_v60  ;;  %v618_v10 = vmul.f32 %v587_v3, %v1970_v13  ;;  %v1379_v60 = vld [vmem:[#allocation8 + $0x38] sm:$0xff]  ;;  %v1378_v61 = vld [vmem:[#allocation8 + $0x30] sm:$0xff] }
 0x14a   : > { %v611_v0 = vmul.f32 0.5, %v610_v62  ;;  %v620_v8 = vmul.f32 %v607_v1, %v1966_v12  ;;  %902 = vmatpush.bf16.msra.mxu1 %v1379_v60  ;;  %v1377_v62 = vld [vmem:[#allocation8 + $0x28] sm:$0xff]  ;;  %v1374_v1 = vld [vmem:[#allocation8 + $0x10] sm:$0xff] }
 0x14b   : > { %v591_v2 = vmul.f32 0.5, %v590_v63  ;;  %v625_v20 = vmul.f32 %v1490_v7, %v618_v10  ;;  %v1376_v63 = vld [vmem:[#allocation8 + $0x20] sm:$0xff] }
 0x14c   : > { %v612_v4 = vsub.f32 1.5, %v611_v0  ;;  %v627_v18 = vmul.f32 %v1490_v7, %v620_v8  ;;  %v1375_v0 = vld [vmem:[#allocation8 + $0x18] sm:$0xff] }
 0x14d   : > { %v592_v6 = vsub.f32 1.5, %v591_v2  ;;  %v632_v25 = vadd.f32 %v1491_v16, %v625_v20  ;;  %v1373_v2 = vld [vmem:[#allocation8 + $0x8] sm:$0xff] }
 0x14e   : > { %v613_v9 = vmul.f32 %v1504_v55, %v612_v4  ;;  %v634_v24 = vadd.f32 %v1491_v16, %v627_v18  ;;  %903 = vmatpush.bf16.msra.mxu1 %v1378_v61 }
 0x14f   : > { %v593_v11 = vmul.f32 %v1506_v57, %v592_v6  ;;  %v1372_v6 = vld [vmem:[#allocation8] sm:$0xff] }
 0x150   : > { %v617_v14 = vsel %vm616_vm10, %v1504_v55, %v613_v9 }
 0x151   : > { %v597_v15 = vsel %vm596_vm12, %v1506_v57, %v593_v11  ;;  %v621_v17 = vmul.f32 %v617_v14, %v1978_v22 }
 0x152   : > { %v619_v19 = vmul.f32 %v597_v15, %v1982_v23  ;;  %904 = vmatpush.bf16.msra.mxu1 %v1377_v62 }
 0x153   : > { %v628_v12 = vmul.f32 %v1490_v7, %v621_v17 }
 0x154   : > { %v626_v21 = vmul.f32 %v1490_v7, %v619_v19 }
 0x155   : > { %v635_v13 = vadd.f32 %v1491_v16, %v628_v12 }
 0x156   : > { %v633_v26 = vadd.f32 %v1491_v16, %v626_v21  ;;  %905 = vmatpush.bf16.msra.mxu1 %v1376_v63  ;;  %v1495_v63 = vld [vmem:[%s2116_s8] ss:$0 sm:$0xff] }
 0x157   : > { %v654_v27 = vpack.c.bf16 %v635_v13, %v634_v24 }
 0x158   : > { %v653_v28 = vpack.c.bf16 %v633_v26, %v632_v25 }
 0x159   : > { %719 = vmatmul.bf16.vlgmr.msra.gmra.mxu3 %v654_v27 }
 0x15a   : > { %714 = vmatmul.bf16.vlgmr.msra.gmra.mxu0 %v653_v28  ;;  %906 = vmatpush.bf16.msra.mxu1 %v1375_v0 }
 0x15e   : > { %907 = vmatpush.bf16.msra.mxu1 %v1374_v1 }
 0x162   : > { %908 = vmatpush.bf16.msra.mxu1 %v1373_v2 }
 0x166   : > { %909 = vmatpush.bf16.msra.mxu1 %v1372_v6 }
 0x1d7   : > { %v715_v30 = vpop.f32.mrf.mxu0 }
 0x1d8   : > { %v716_v22 = vadd.f32 %v1492_v29, %v715_v30 }
 0x1da   : > { %v725_v31 = vmax.f32 %v716_v22, 0.0 }
 0x1dc   : > { %731 = vadd.xlane.f32.xlu2 %v725_v31  ;;  %v720_v23 = vpop.f32.mrf.mxu3 }
 0x1dd   : > { %v721_v32 = vadd.f32 %v1492_v29, %v720_v23 }
 0x1df   : > { %v727_v33 = vmax.f32 %v721_v32, 0.0  ;;  %v717_v34 = vpop.f32.mrf.mxu0 }
 0x1e0   : > { %v718_v35 = vadd.f32 %v1492_v29, %v717_v34 }
 0x1e1   : > { %735 = vadd.xlane.f32.xlu1 %v727_v33 }
 0x1e2   : > { %v726_v36 = vmax.f32 %v718_v35, 0.0 }
 0x1e4   : > { %733 = vadd.xlane.f32.xlu0 %v726_v36  ;;  %v722_v37 = vpop.f32.mrf.mxu3 }
 0x1e5   : > { %v723_v38 = vadd.f32 %v1492_v29, %v722_v37 }
 0x1e7   : > { %v728_v39 = vmax.f32 %v723_v38, 0.0 }
 0x1e9   : > { %737 = vadd.xlane.f32.xlu2 %v728_v39 }
 0x24f   : > { %v732_v40 = vpop.xlane.xlu2 %731 }
 0x250   : > { %v739_v41 = vmul.f32 0.03125, %v732_v40 }
 0x252   : > { %v743_v42 = vsub.f32 %v725_v31, %v739_v41 }
 0x254   : > { %v736_v43 = vpop.xlane.xlu1 %735  ;;  %v2001_v44 = vsel %vm747_vm13, %v743_v42, 0.0 }
 0x255   : > { %v741_v45 = vmul.f32 0.03125, %v736_v43  ;;  %v754_v46 = vmul.f32 %v2001_v44, %v2001_v44 }
 0x257   : > { %v745_v47 = vsub.f32 %v727_v33, %v741_v45  ;;  %758 = vadd.xlane.f32.xlu0 %v754_v46  ;;  %v734_v48 = vpop.xlane.xlu0 %733  ;;  %v1494_v45 = vld [vmem:[%s2114_s6] ss:$0 sm:$0xff] }
 0x258   : > { %v740_v49 = vmul.f32 0.03125, %v734_v48 }
 0x259   : > { %v2007_v50 = vsel %vm747_vm13, %v745_v47, 0.0 }
 0x25a   : > { %v744_v51 = vsub.f32 %v726_v36, %v740_v49  ;;  %v756_v52 = vmul.f32 %v2007_v50, %v2007_v50  ;;  %v1493_v36 = vld [vmem:[%s2113_s5] ss:$0 sm:$0xff] }
 0x25c   : > { %v738_v53 = vpop.xlane.xlu2 %737  ;;  %762 = vadd.xlane.f32.xlu2 %v756_v52  ;;  %v2013_v54 = vsel %vm747_vm13, %v744_v51, 0.0 }
 0x25d   : > { %v742_v55 = vmul.f32 0.03125, %v738_v53  ;;  %v755_v56 = vmul.f32 %v2013_v54, %v2013_v54 }
 0x25f   : > { %v746_v57 = vsub.f32 %v728_v39, %v742_v55  ;;  %760 = vadd.xlane.f32.xlu1 %v755_v56 }
 0x261   : > { %v2019_v58 = vsel %vm747_vm13, %v746_v57, 0.0 }
 0x262   : > { %v757_v59 = vmul.f32 %v2019_v58, %v2019_v58 }
 0x264   : > { %764 = vadd.xlane.f32.xlu0 %v757_v59 }
 0x2ca   : > { %v759_v3 = vpop.xlane.xlu0 %758 }
 0x2cb   : > { %v766_v4 = vmul.f32 0.03125, %v759_v3 }
 0x2cd   : > { %v770_v7 = vadd.f32 1e-05, %v766_v4 }
 0x2cf   : > { %1507 = vrsqrt.f32 %v770_v7  ;;  %v763_v8 = vpop.xlane.xlu2 %762  ;;  %vm780_vm15 = vweird.f32 %v770_v7 }
 0x2d0   : > { %v768_v9 = vmul.f32 0.03125, %v763_v8 }
 0x2d2   : > { %v772_v10 = vadd.f32 1e-05, %v768_v9  ;;  %v761_v11 = vpop.xlane.xlu1 %760 }
 0x2d3   : > { %v767_v14 = vmul.f32 0.03125, %v761_v11 }
 0x2d4   : > { %1509 = vrsqrt.f32 %v772_v10  ;;  %vm800_vm8 = vweird.f32 %v772_v10 }
 0x2d5   : > { %v1508_v15 = vpop.eup %1507  ;;  %v771_v16 = vadd.f32 1e-05, %v767_v14 }
 0x2d6   : > { %v775_v17 = vmul.f32 %v1508_v15, %v770_v7  ;;  %vm781_vm14 = vweird.f32 %v1508_v15 }
 0x2d7   : > { %1511 = vrsqrt.f32 %v771_v16  ;;  %v765_v18 = vpop.xlane.xlu0 %764  ;;  %vm782_vm0 = vmor %vm780_vm15, %vm781_vm14  ;;  %vm790_vm2 = vweird.f32 %v771_v16 }
 0x2d8   : > { %v776_v19 = vmul.f32 %v1508_v15, %v775_v17  ;;  %v769_v20 = vmul.f32 0.03125, %v765_v18 }
 0x2da   : > { %v777_v12 = vmul.f32 0.5, %v776_v19  ;;  %v773_v21 = vadd.f32 1e-05, %v769_v20  ;;  %v1510_v24 = vpop.eup %1509 }
 0x2db   : > { %v795_v27 = vmul.f32 %v1510_v24, %v772_v10  ;;  %vm801_vm5 = vweird.f32 %v1510_v24 }
 0x2dc   : > { %v778_v13 = vsub.f32 1.5, %v777_v12  ;;  %1513 = vrsqrt.f32 %v773_v21  ;;  %vm810_vm6 = vweird.f32 %v773_v21  ;;  %vm802_vm9 = vmor %vm800_vm8, %vm801_vm5 }
 0x2dd   : > { %v1512_v25 = vpop.eup %1511  ;;  %v796_v22 = vmul.f32 %v1510_v24, %v795_v27 }
 0x2de   : > { %v779_v26 = vmul.f32 %v1508_v15, %v778_v13  ;;  %v785_v28 = vmul.f32 %v1512_v25, %v771_v16  ;;  %vm791_vm1 = vweird.f32 %v1512_v25 }
 0x2df   : > { %v797_v37 = vmul.f32 0.5, %v796_v22  ;;  %vm792_vm3 = vmor %vm790_vm2, %vm791_vm1 }
 0x2e0   : > { %v786_v29 = vmul.f32 %v1512_v25, %v785_v28  ;;  %v783_v23 = vsel %vm782_vm0, %v1508_v15, %v779_v26 }
 0x2e1   : > { %v814_v35 = vmul.f32 %v783_v23, %v2001_v44  ;;  %v798_v46 = vsub.f32 1.5, %v797_v37  ;;  %v1387_v23 = vld [vmem:[#allocation10 + $0x38] sm:$0xff]  ;;  %v1381_v37 = vld [vmem:[#allocation10 + $0x8] sm:$0xff] }
 0x2e2   : > { %v1514_v30 = vpop.eup %1513  ;;  %v787_v31 = vmul.f32 0.5, %v786_v29  ;;  %1095 = vmatpush.bf16.msra.mxu2 %v1387_v23 }
 0x2e3   : > { %v805_v32 = vmul.f32 %v1514_v30, %v773_v21  ;;  %v821_v43 = vmul.f32 %v1493_v36, %v814_v35  ;;  %vm811_vm4 = vweird.f32 %v1514_v30  ;;  %v799_v51 = vmul.f32 %v1510_v24, %v798_v46  ;;  %v1383_v35 = vld [vmem:[#allocation10 + $0x18] sm:$0xff] }
 0x2e4   : > { %v788_v33 = vsub.f32 1.5, %v787_v31  ;;  %vm812_vm7 = vmor %vm810_vm6, %vm811_vm4 }
 0x2e5   : > { %v806_v34 = vmul.f32 %v1514_v30, %v805_v32  ;;  %v828_v48 = vadd.f32 %v1494_v45, %v821_v43  ;;  %v1386_v32 = vld [vmem:[#allocation10 + $0x30] sm:$0xff] }
 0x2e6   : > { %v789_v38 = vmul.f32 %v1512_v25, %v788_v33  ;;  %1096 = vmatpush.bf16.msra.mxu2 %v1386_v32  ;;  %v1385_v33 = vld [vmem:[#allocation10 + $0x28] sm:$0xff] }
 0x2e7   : > { %v807_v39 = vmul.f32 0.5, %v806_v34  ;;  %v1384_v34 = vld [vmem:[#allocation10 + $0x20] sm:$0xff] }
 0x2e8   : > { %v793_v40 = vsel %vm792_vm3, %v1512_v25, %v789_v38 }
 0x2e9   : > { %v808_v41 = vsub.f32 1.5, %v807_v39  ;;  %v815_v42 = vmul.f32 %v793_v40, %v2013_v54  ;;  %v803_v54 = vsel %vm802_vm9, %v1510_v24, %v799_v51  ;;  %v1380_v39 = vld [vmem:[#allocation10] sm:$0xff] }
 0x2ea   : > { %v816_v56 = vmul.f32 %v803_v54, %v2007_v50  ;;  %1097 = vmatpush.bf16.msra.mxu2 %v1385_v33  ;;  %v1498_v33 = vld [vmem:[%s2120_s12] ss:$0 sm:$0xff] }
 0x2eb   : > { %v822_v44 = vmul.f32 %v1493_v36, %v815_v42  ;;  %v809_v47 = vmul.f32 %v1514_v30, %v808_v41 }
 0x2ec   : > { %v823_v59 = vmul.f32 %v1493_v36, %v816_v56 }
 0x2ed   : > { %v829_v49 = vadd.f32 %v1494_v45, %v822_v44  ;;  %v813_v53 = vsel %vm812_vm7, %v1514_v30, %v809_v47 }
 0x2ee   : > { %v817_v55 = vmul.f32 %v813_v53, %v2019_v58  ;;  %v830_v61 = vadd.f32 %v1494_v45, %v823_v59  ;;  %1098 = vmatpush.bf16.msra.mxu2 %v1384_v34 }
 0x2ef   : > { %v849_v52 = vpack.c.bf16 %v829_v49, %v828_v48 }
 0x2f0   : > { %v824_v57 = vmul.f32 %v1493_v36, %v817_v55  ;;  %v1382_v36 = vld [vmem:[#allocation10 + $0x10] sm:$0xff] }
 0x2f1   : > { %910 = vmatmul.bf16.vlgmr.msra.gmra.mxu1 %v849_v52 }
 0x2f2   : > { %v831_v60 = vadd.f32 %v1494_v45, %v824_v57  ;;  %1099 = vmatpush.bf16.msra.mxu2 %v1383_v35 }
 0x2f4   : > { %v850_v62 = vpack.c.bf16 %v831_v60, %v830_v61 }
 0x2f6   : > { %1100 = vmatpush.bf16.msra.mxu2 %v1382_v36 }
 0x2fa   : > { %1101 = vmatpush.bf16.msra.mxu2 %v1381_v37 }
 0x2fe   : > { %1102 = vmatpush.bf16.msra.mxu2 %v1380_v39 }
 0x301   : > { %915 = vmatmul.bf16.gmra.mxu1 %v850_v62 }
 0x36e   : > { %v911_v0 = vpop.f32.mrf.mxu1 }
 0x36f   : > { %v912_v1 = vadd.f32 %v1495_v63, %v911_v0 }
 0x371   : > { %v921_v2 = vmax.f32 %v912_v1, 0.0 }
 0x373   : > { %927 = vadd.xlane.f32.xlu1 %v921_v2 }
 0x376   : > { %v913_v3 = vpop.f32.mrf.mxu1 }
 0x377   : > { %v914_v4 = vadd.f32 %v1495_v63, %v913_v3 }
 0x379   : > { %v922_v6 = vmax.f32 %v914_v4, 0.0 }
 0x37b   : > { %929 = vadd.xlane.f32.xlu2 %v922_v6 }
 0x37e   : > { %v916_v58 = vpop.f32.mrf.mxu1 }
 0x37f   : > { %v917_v50 = vadd.f32 %v1495_v63, %v916_v58 }
 0x381   : > { %v923_v7 = vmax.f32 %v917_v50, 0.0 }
 0x383   : > { %931 = vadd.xlane.f32.xlu0 %v923_v7 }
 0x386   : > { %v918_v8 = vpop.f32.mrf.mxu1 }
 0x387   : > { %v919_v9 = vadd.f32 %v1495_v63, %v918_v8  ;;  %v1497_v8 = vld [vmem:[%s2118_s10] ss:$0 sm:$0xff] }
 0x389   : > { %v924_v10 = vmax.f32 %v919_v9, 0.0 }
 0x38b   : > { %933 = vadd.xlane.f32.xlu1 %v924_v10 }
 0x3e6   : > { %v928_v11 = vpop.xlane.xlu1 %927 }
 0x3e7   : > { %v935_v14 = vmul.f32 0.03125, %v928_v11 }
 0x3e9   : > { %v939_v15 = vsub.f32 %v921_v2, %v935_v14  ;;  %v1496_v2 = vld [vmem:[%s2117_s9] ss:$0 sm:$0xff] }
 0x3eb   : > { %v2038_v16 = vsel %vm747_vm13, %v939_v15, 0.0 }
 0x3ec   : > { %v947_v17 = vmul.f32 %v2038_v16, %v2038_v16 }
 0x3ee   : > { %v930_v18 = vpop.xlane.xlu2 %929  ;;  %951 = vadd.xlane.f32.xlu2 %v947_v17 }
 0x3ef   : > { %v936_v19 = vmul.f32 0.03125, %v930_v18 }
 0x3f1   : > { %v940_v20 = vsub.f32 %v922_v6, %v936_v19 }
 0x3f3   : > { %v2044_v12 = vsel %vm747_vm13, %v940_v20, 0.0 }
 0x3f4   : > { %v948_v21 = vmul.f32 %v2044_v12, %v2044_v12 }
 0x3f6   : > { %953 = vadd.xlane.f32.xlu0 %v948_v21  ;;  %v932_v24 = vpop.xlane.xlu0 %931 }
 0x3f7   : > { %v937_v13 = vmul.f32 0.03125, %v932_v24 }
 0x3f9   : > { %v941_v25 = vsub.f32 %v923_v7, %v937_v13 }
 0x3fb   : > { %v2050_v26 = vsel %vm747_vm13, %v941_v25, 0.0 }
 0x3fc   : > { %v949_v27 = vmul.f32 %v2050_v26, %v2050_v26 }
 0x3fe   : > { %v934_v28 = vpop.xlane.xlu1 %933  ;;  %955 = vadd.xlane.f32.xlu1 %v949_v27 }
 0x3ff   : > { %v938_v29 = vmul.f32 0.03125, %v934_v28 }
 0x401   : > { %v942_v30 = vsub.f32 %v924_v10, %v938_v29 }
 0x403   : > { %v2056_v22 = vsel %vm747_vm13, %v942_v30, 0.0 }
 0x404   : > { %v950_v31 = vmul.f32 %v2056_v22, %v2056_v22 }
 0x406   : > { %957 = vadd.xlane.f32.xlu2 %v950_v31 }
 0x461   : > { %v952_v5 = vpop.xlane.xlu2 %951 }
 0x462   : > { %v959_v38 = vmul.f32 0.03125, %v952_v5 }
 0x464   : > { %v963_v40 = vadd.f32 1e-05, %v959_v38 }
 0x466   : > { %1515 = vrsqrt.f32 %v963_v40  ;;  %vm973_vm11 = vweird.f32 %v963_v40 }
 0x469   : > { %v954_v41 = vpop.xlane.xlu0 %953 }
 0x46a   : > { %v960_v42 = vmul.f32 0.03125, %v954_v41 }
 0x46c   : > { %v1516_v43 = vpop.eup %1515  ;;  %v964_v45 = vadd.f32 1e-05, %v960_v42 }
 0x46d   : > { %v968_v46 = vmul.f32 %v1516_v43, %v963_v40  ;;  %vm974_vm10 = vweird.f32 %v1516_v43 }
 0x46e   : > { %1517 = vrsqrt.f32 %v964_v45  ;;  %vm975_vm12 = vmor %vm973_vm11, %vm974_vm10  ;;  %vm983_vm14 = vweird.f32 %v964_v45 }
 0x46f   : > { %v969_v44 = vmul.f32 %v1516_v43, %v968_v46 }
 0x471   : > { %v970_v47 = vmul.f32 0.5, %v969_v44  ;;  %v956_v48 = vpop.xlane.xlu1 %955 }
 0x472   : > { %v961_v49 = vmul.f32 0.03125, %v956_v48 }
 0x473   : > { %v971_v51 = vsub.f32 1.5, %v970_v47 }
 0x474   : > { %v1518_v52 = vpop.eup %1517  ;;  %v965_v53 = vadd.f32 1e-05, %v961_v49 }
 0x475   : > { %v972_v54 = vmul.f32 %v1516_v43, %v971_v51  ;;  %v978_v55 = vmul.f32 %v1518_v52, %v964_v45  ;;  %vm984_vm13 = vweird.f32 %v1518_v52 }
 0x476   : > { %1519 = vrsqrt.f32 %v965_v53  ;;  %vm985_vm15 = vmor %vm983_vm14, %vm984_vm13  ;;  %vm993_vm1 = vweird.f32 %v965_v53 }
 0x477   : > { %v979_v56 = vmul.f32 %v1518_v52, %v978_v55  ;;  %v976_v60 = vsel %vm975_vm12, %v1516_v43, %v972_v54 }
 0x478   : > { %v1007_v1 = vmul.f32 %v976_v60, %v2038_v16 }
 0x479   : > { %v980_v57 = vmul.f32 0.5, %v979_v56  ;;  %v958_v59 = vpop.xlane.xlu2 %957 }
 0x47a   : > { %v962_v61 = vmul.f32 0.03125, %v958_v59  ;;  %v1014_v7 = vmul.f32 %v1496_v2, %v1007_v1 }
 0x47b   : > { %v981_v62 = vsub.f32 1.5, %v980_v57 }
 0x47c   : > { %v1520_v63 = vpop.eup %1519  ;;  %v966_v0 = vadd.f32 1e-05, %v962_v61  ;;  %v1021_v15 = vadd.f32 %v1497_v8, %v1014_v7 }
 0x47d   : > { %v982_v3 = vmul.f32 %v1518_v52, %v981_v62  ;;  %v988_v4 = vmul.f32 %v1520_v63, %v965_v53  ;;  %vm994_vm0 = vweird.f32 %v1520_v63 }
 0x47e   : > { %1521 = vrsqrt.f32 %v966_v0  ;;  %vm995_vm2 = vmor %vm993_vm1, %vm994_vm0  ;;  %vm1003_vm4 = vweird.f32 %v966_v0 }
 0x47f   : > { %v986_v6 = vsel %vm985_vm15, %v1518_v52, %v982_v3  ;;  %v989_v58 = vmul.f32 %v1520_v63, %v988_v4 }
 0x480   : > { %v1008_v50 = vmul.f32 %v986_v6, %v2044_v12 }
 0x481   : > { %v990_v9 = vmul.f32 0.5, %v989_v58 }
 0x482   : > { %v1015_v10 = vmul.f32 %v1496_v2, %v1008_v50 }
 0x483   : > { %v991_v11 = vsub.f32 1.5, %v990_v9 }
 0x484   : > { %v1522_v14 = vpop.eup %1521  ;;  %v1022_v16 = vadd.f32 %v1497_v8, %v1015_v10 }
 0x485   : > { %v992_v17 = vmul.f32 %v1520_v63, %v991_v11  ;;  %v998_v18 = vmul.f32 %v1522_v14, %v966_v0  ;;  %vm1004_vm3 = vweird.f32 %v1522_v14 }
 0x486   : > { %v1042_v19 = vpack.c.bf16 %v1022_v16, %v1021_v15  ;;  %vm1005_vm5 = vmor %vm1003_vm4, %vm1004_vm3 }
 0x487   : > { %v999_v20 = vmul.f32 %v1522_v14, %v998_v18  ;;  %v996_v12 = vsel %vm995_vm2, %v1520_v63, %v992_v17 }
 0x488   : > { %1103 = vmatmul.bf16.vlgmr.msra.gmra.mxu2 %v1042_v19  ;;  %v1009_v13 = vmul.f32 %v996_v12, %v2050_v26 }
 0x489   : > { %v1000_v21 = vmul.f32 0.5, %v999_v20 }
 0x48a   : > { %v1016_v29 = vmul.f32 %v1496_v2, %v1009_v13 }
 0x48b   : > { %v1001_v24 = vsub.f32 1.5, %v1000_v21 }
 0x48c   : > { %v1023_v31 = vadd.f32 %v1497_v8, %v1016_v29 }
 0x48d   : > { %v1002_v25 = vmul.f32 %v1522_v14, %v1001_v24 }
 0x48f   : > { %v1006_v27 = vsel %vm1005_vm5, %v1522_v14, %v1002_v25 }
 0x490   : > { %v1010_v28 = vmul.f32 %v1006_v27, %v2056_v22 }
 0x492   : > { %v1017_v30 = vmul.f32 %v1496_v2, %v1010_v28 }
 0x494   : > { %v1024_v23 = vadd.f32 %v1497_v8, %v1017_v30 }
 0x496   : > { %v1043_v32 = vpack.c.bf16 %v1024_v23, %v1023_v31 }
 0x498   : > { %1108 = vmatmul.bf16.gmra.mxu2 %v1043_v32 }
 0x50b   : > { %v1104_v34 = vpop.f32.mrf.mxu2 }
 0x50c   : > { %v1105_v35 = vadd.f32 %v1498_v33, %v1104_v34 }
 0x50e   : > { %1114 = vst [vmem:[%s524_s20] sm:$0xff] %v1105_v35 }
 0x513   : > { %v1106_v26 = vpop.f32.mrf.mxu2 }
 0x514   : > { %v1107_v36 = vadd.f32 %v1498_v33, %v1106_v26 }
 0x516   : > { %1115 = vst [vmem:[%s524_s20 + $0x8] sm:$0xff] %v1107_v36 }
 0x51b   : > { %v1109_v22 = vpop.f32.mrf.mxu2 }
 0x51c   : > { %v1110_v37 = vadd.f32 %v1498_v33, %v1109_v22 }
 0x51e   : > { %1116 = vst [vmem:[%s524_s20 + $0x10] sm:$0xff] %v1110_v37 }
 0x523   : > { %v1111_v5 = vpop.f32.mrf.mxu2 }
 0x524   : > { %v1112_v38 = vadd.f32 %v1498_v33, %v1111_v5 }
 0x526   : > { %1117 = vst [vmem:[%s524_s20 + $0x18] sm:$0xff] %v1112_v38 }
 0x527   : > { %1700 = shalt.err (!%p1697_p11)
}
 0x528   : > { %s1757_s3 = smov 128   ;;  %s1758_s20 = smov 8  }
 0x529   : > { %1415 = dma.vmem_to_hbm [thread:$0]  (%p1913_p3), %s1132_s21, 512, %s1134_s1, %s1119_s15, %s1757_s3, %s1757_s3, %s1758_s20  }
 0x52a PF: > { %s1148_s7 = sand.u32 1, %s1735_s25   ;;  %p2142_p12 = scmp.ge.s32.totalorder %s1747_s28, 2 }
 0x52b   : > { %s1149_s23 = scalar_lea.sflag [#allocation4], %s1148_s7 }
 0x52c   : > { %p1435_p13 = pnand %p2142_p12, %p1864_p6 }
 0x52e   : > { %p1436_p0 = pneg %p1435_p13 }
 0x530   : > { %1730 = dma.done.wait (%p1436_p0), %s1149_s23, 512  }
 0x531   : > { %1732 = vsyncadd (%p1436_p0), %s1149_s23, 4294966784  ;;  %s2143_s24 = sld [smem:[#allocation16_spill]]  ;;  %p28_p5 = scmp.ge.s32.totalorder %s1903_s30, 4  }
 0x532   : > { %s2144_s27 = sld [smem:[#allocation18_spill]]  ;;  %s2145_s25 = smov %s1739_s26 }
 0x533   : > { %s2147_s28 = smov %s1903_s30  ;;  %30 = sbr.rel (!%p28_p5) target bundleno = 12 (0xc), region = 133 }
 0x537   : > { %s2146_s26 = smov %s2143_s24 }
 0x538   :  { %1155 = vsyncpa [#allocation3], 1 }
 0x539   :  { %1157 = vsyncpa [#allocation3 + $0x1], 1 }
 0x53a   :  { %1158 = vsyncpa [#allocation6], 1 }
 0x53b   :  { %1159 = vsyncpa [#allocation9], 1 }
 0x53c   :  { %1160 = vsyncpa [#allocation4], 1 }
 0x53d   :  { %1162 = vsyncpa [#allocation4 + $0x1], 1 }

// kernel: tpu_custom_call.1
= control target key start
LH: loop header
LB: loop body
LE: loop exit
PB: predicated region body
PF: predicated region fallthrough
CT: control target
= control target key end

     0   :  { %s2108_s0 = inlined_call_operand.hbm [shape: f32[64,128], index: 0, kind: input, shape index: {}]   ;;  %s2109_s1 = inlined_call_operand.hbm [shape: f32[1,128], index: 1, kind: input, shape index: {}]   ;;  %s2110_s2 = inlined_call_operand.vmem [shape: f32[1,128], index: 2, kind: input, shape index: {}]   ;;  %s2111_s3 = inlined_call_operand.hbm [shape: bf16[128,128], index: 3, kind: input, shape index: {}]   ;;  %s2112_s4 = inlined_call_operand.vmem [shape: f32[1,128], index: 4, kind: input, shape index: {}]   ;;  %s2113_s5 = inlined_call_operand.vmem [shape: f32[1,128], index: 5, kind: input, shape index: {}]   ;;  %s2114_s6 = inlined_call_operand.vmem [shape: f32[1,128], index: 6, kind: input, shape index: {}]   ;;  %s2115_s7 = inlined_call_operand.hbm [shape: bf16[128,128], index: 7, kind: input, shape index: {}]   ;;  %s2116_s8 = inlined_call_operand.vmem [shape: f32[1,128], index: 8, kind: input, shape index: {}]   ;;  %s2117_s9 = inlined_call_operand.vmem [shape: f32[1,128], index: 9, kind: input, shape index: {}]   ;;  %s2118_s10 = inlined_call_operand.vmem [shape: f32[1,128], index: 10, kind: input, shape index: {}]   ;;  %s2119_s11 = inlined_call_operand.hbm [shape: bf16[128,128], index: 11, kind: input, shape index: {}]   ;;  %s2120_s12 = inlined_call_operand.vmem [shape: f32[1,128], index: 12, kind: input, shape index: {}]   ;;  %s2121_s13 = inlined_call_operand.hbm [shape: f32[64,128], index: 13, kind: output, shape index: {}]  }
   0x1   :  { %2124 = sst [smem:[#allocation19_spill]] %s2109_s1 }
   0x2   :  { %2125 = sst [smem:[#allocation20_spill]] %s2111_s3 }
   0x3   :  { %2126 = sst [smem:[#allocation21_spill]] %s2115_s7 }
   0x4   :  { %2127 = sst [smem:[#allocation22_spill]] %s2119_s11 }
   0x5   :  { %18 = vsyncpa [#allocation3], 0 }
   0x6   :  { %20 = vsyncpa [#allocation3 + $0x1], 0 }
   0x7   :  { %21 = vsyncpa [#allocation6], 0 }
   0x8   :  { %22 = vsyncpa [#allocation9], 0 }
   0x9   :  { %23 = vsyncpa [#allocation4], 0 }
   0xa   :  { %25 = vsyncpa [#allocation4 + $0x1], 0  ;;  %s1829_s25 = smov 0   ;;  %s1831_s26 = smov 0  }
   0xb   :  { %s1833_s27 = smov 0   ;;  %s1835_s28 = smov 0  }
   0xc LB: > { %2128 = sst [smem:[#allocation16_spill]] %s1743_s27  ;;  %s1850_s29 = sadd.s32 4294967295, %s1747_s28   ;;  %s1747_s28 = sphi %s1835_s28, %s2147_s28   ;;  %s1743_s27 = sphi %s1833_s27, %s2144_s27   ;;  %s1739_s26 = sphi %s1831_s26, %s2146_s26   ;;  %s1735_s25 = sphi %s1829_s25, %s2145_s25  }
   0xd   : > { %s1245_s30 = sadd.s32 4294967294, %s1747_s28   ;;  %p51_p0 = scmp.ne.s32.totalorder %s1739_s26, %s1735_s25 }
   0xe   : > { %p52_p1 = scmp.eq.s32.totalorder %s1850_s29, 0  ;;  %p327_p2 = scmp.eq.s32.totalorder %s1850_s29, 1 }
   0xf   : > { %p333_p3 = scmp.eq.s32.totalorder %s1245_s30, 1  ;;  %p1246_p5 = scmp.ge.s32.totalorder %s1747_s28, 1 }
  0x10   : > { %p1859_p4 = por %p52_p1, %p51_p0  ;;  %p340_p7 = scmp.lt.s32.totalorder %s1747_s28, 3 }
  0x11   : > { %p1864_p6 = por %p333_p3, %p51_p0  ;;  %s2132_s1 = sld [smem:[#allocation19_spill]] }
  0x12   : > { %p1872_p8 = pnand %p1246_p5, %p340_p7  ;;  %s1749_s20 = smov [#allocation5]  }
  0x13   : > { %s2130_s15 = scalar_select %p1864_p6, 1, 0 }
  0x14   : > { %p1417_p10 = pneg %p1872_p8  ;;  %s354_s21 = sshll.u32 %s1749_s20, 4  ;;  %s355_s21 = int_to_ptr.vmem [resolvable:$true] %s354_s21 }
  0x15   : > { %2131 = sst [smem:[#allocation17_spill]] %s2130_s15  ;;  %s1750_s16 = smov [#allocation8]  }
  0x16   : > { %p1881_p11 = pnand %p1417_p10, %p52_p1  ;;  %s2135_s7 = sld [smem:[#allocation21_spill]] }
  0x17   : > { %s352_s18 = sshll.u32 %s2132_s1, 4  ;;  %s391_s17 = sshll.u32 %s1750_s16, 4  ;;  %s353_s18 = int_to_ptr.hbm [resolvable:$true] %s352_s18  ;;  %s392_s17 = int_to_ptr.vmem [resolvable:$true] %s391_s17 }
  0x18   : > { %1420 = dma.hbm_to_vmem [thread:$0]  (!%p1881_p11), %s353_s18, 16, %s355_s21, [#allocation6]  }
  0x19   : > { %s2136_s3 = sld [smem:[#allocation20_spill]]  ;;  %s1751_s23 = smov 64  }
  0x1a   : > { %s1752_s24 = smov 4   ;;  %s2137_s11 = sld [smem:[#allocation22_spill]] }
  0x1b   : > { %s1753_s1 = smov [#allocation7]   ;;  %s1754_s20 = smov [#allocation10]  }
  0x1c   : > { %s389_s30 = sshll.u32 %s2135_s7, 4  ;;  %s368_s16 = sshll.u32 %s1753_s1, 4  ;;  %s390_s30 = int_to_ptr.hbm [resolvable:$true] %s389_s30  ;;  %s369_s16 = int_to_ptr.vmem [resolvable:$true] %s368_s16 }
  0x1d   : > { %1426 = dma.hbm_to_vmem [thread:$0]  (!%p1881_p11), %s390_s30, 1024, %s392_s17, [#allocation9], %s1751_s23, %s1751_s23, %s1752_s24  }
  0x1e   : > { %s1903_s30 = sadd.s32 1, %s1747_s28   ;;  %s38_s7 = sadd.s32 1, %s1743_s27 }
  0x1f   : > { %s366_s15 = sshll.u32 %s2136_s3, 4  ;;  %s414_s3 = sshll.u32 %s1754_s20, 4  ;;  %s367_s15 = int_to_ptr.hbm [resolvable:$true] %s366_s15  ;;  %s415_s3 = int_to_ptr.vmem [resolvable:$true] %s414_s3 }
  0x20   : > { %s412_s21 = sshll.u32 %s2137_s11, 4  ;;  %s35_s17 = ssub.s32 %s1747_s28, %s1903_s30  ;;  %s413_s21 = int_to_ptr.hbm [resolvable:$true] %s412_s21 }
  0x21   : > { %1423 = dma.hbm_to_vmem [thread:$0]  (!%p1881_p11), %s367_s15, 1024, %s369_s16, [#allocation6], %s1751_s23, %s1751_s23, %s1752_s24  }
  0x22   : > { %1429 = dma.hbm_to_vmem [thread:$0]  (!%p1881_p11), %s413_s21, 1024, %s415_s3, [#allocation9], %s1751_s23, %s1751_s23, %s1752_s24  }
  0x23   : > { %p45_p12 = scmp.ne.s32.totalorder %s1743_s27, %s1739_s26  ;;  %p36_p13 = scmp.eq.s32.totalorder %s35_s17, 0 }
  0x24   : > { %p46_p0 = scmp.eq.s32.totalorder %s1747_s28, 0  ;;  %p1442_p5 = scmp.lt.s32.totalorder %s1747_s28, 2 }
  0x25   : > { %p1913_p3 = por %p327_p2, %p45_p12  ;;  %s431_s1 = sand.u32 1, %s1743_s27  }
  0x26   : > { %s1919_s15 = scalar_select %p36_p13, %s1743_s27, %s38_s7  }
  0x27   : > { %p47_p7 = por %p46_p0, %p45_p12  ;;  %s1252_s22 = sshll.u32 %s431_s1, 5 }
  0x28   : > { %2139 = sst [smem:[#allocation18_spill]] %s1919_s15  ;;  %s1363_s3 = sshll.u32 %s1747_s28, 5 }
  0x29   : > { %s440_s21 = scalar_lea.hbm %s2108_s0, %s1363_s3  ;;  %s435_s16 = scalar_lea.vmem [#allocation2], %s1252_s22 }
  0x2a   : > { %s443_s20 = sshll.u32 %s435_s16, 4  ;;  %s441_s17 = sshll.u32 %s440_s21, 4  ;;  %s444_s20 = int_to_ptr.vmem [resolvable:$true] %s443_s20  ;;  %s442_s17 = int_to_ptr.hbm [resolvable:$true] %s441_s17 }
  0x2b   : > { %p1926_p2 = pnand %p1442_p5, %p47_p7  ;;  %s432_s7 = scalar_lea.sflag [#allocation3], %s431_s1 }
  0x2c   : > { %s1643_s15 = sshra.s32 %s442_s17, 4  ;;  %s1650_s23 = scalar_lea.hbm %s2108_s0, 64  ;;  %s1644_s15 = int_to_ptr.hbm [resolvable:$true] %s1643_s15 }
  0x2d   : > { %s1645_s27 = scalar_lea.hbm %s1644_s15, 32  ;;  %p1647_p11 = pneg %p1926_p2 }
  0x2e   : > { %p1646_p10 = scmp.ne.s32.totalorder %s1644_s15, %s1645_s27  ;;  %p1651_p0 = scmp.lt.s32.totalorder %s1644_s15, %s2108_s0 }
  0x2f   : > { %p1652_p5 = scmp.lt.s32.totalorder %s1650_s23, %s1645_s27 }
  0x30   : > { %p1648_p12 = pnand %p1647_p11, %p1646_p10 }
  0x31   : > { %p1653_p7 = por %p1652_p5, %p1651_p0 }
  0x32   : > { %p1649_p13 = pneg %p1648_p12 }
  0x34   : > { %p1654_p9 = pnand %p1653_p7, %p1649_p13 }
  0x36   : > { %1657 = shalt.err (!%p1654_p9)
}
  0x37   : > { %s1755_s1 = smov 128   ;;  %s1756_s16 = smov 8  }
  0x38   : > { %1433 = dma.hbm_to_vmem [thread:$0]  (!%p1926_p2), %s442_s17, 512, %s444_s20, %s432_s7, %s1755_s1, %s1755_s1, %s1756_s16  }
  0x39   : > { %455 = sbr.rel (%p1872_p8) target bundleno = 1322 (0x52a), region = 72  ;;  %s1943_s3 = sand.u32 (!%p1872_p8), 1, %s1739_s26  }
  0x3a   : > { %s1256_s15 = sshll.u32 (!%p1872_p8), %s1943_s3, 5  ;;  %s458_s27 = scalar_lea.sflag (!%p1872_p8), [#allocation3], %s1943_s3 }
  0x3b   : > { %s461_s22 = scalar_lea.vmem (!%p1872_p8), [#allocation2], %s1256_s15 }
  0x3e   : > { %1718 = dma.done.wait (%p1859_p4), %s458_s27, 512  }
  0x3f   : > { %1720 = vsyncadd (%p1859_p4), %s458_s27, 4294966784 }
  0x40   : > { %1722 = dma.done.wait (%p52_p1), [#allocation6], 1040  }
  0x41   : > { %1724 = vsyncadd (%p52_p1), [#allocation6], 4294966256 }
  0x42   : > { %1726 = dma.done.wait (%p52_p1), [#allocation9], 2048  }
  0x43   : > { %1728 = vsyncadd (%p52_p1), [#allocation9], 4294965248  ;;  %v529_v0 = vld [vmem:[%s461_s22 + $0x10] sm:$0xff]  ;;  %v527_v1 = vld [vmem:[%s461_s22] sm:$0xff]  ;;  %v549_v4 = vlaneseq  ;;  %s524_s20 = scalar_lea.vmem [#allocation11], %s1256_s15  ;;  %s1388_s17 = sshll.u32 %s1850_s29, 5 }
  0x44   : > { %537 = vadd.xlane.f32.xlu1 %v529_v0  ;;  %533 = vadd.xlane.f32.xlu0 %v527_v1  ;;  %v530_v2 = vld [vmem:[%s461_s22 + $0x18] sm:$0xff]  ;;  %v528_v3 = vld [vmem:[%s461_s22 + $0x8] sm:$0xff]  ;;  %s1130_s24 = scalar_lea.hbm %s2121_s13, %s1388_s17  ;;  %s1131_s21 = sshll.u32 %s524_s20, 4  ;;  %s1132_s21 = int_to_ptr.vmem [resolvable:$true] %s1131_s21 }
  0x45   : > { %v1961_v5 = vand.u32 127, %v549_v4  ;;  %v1371_v26 = vld [vmem:[#allocation7 + $0x38] sm:$0xff]  ;;  %v1370_v27 = vld [vmem:[#allocation7 + $0x30] sm:$0xff]  ;;  %v1369_v28 = vld [vmem:[#allocation7 + $0x28] sm:$0xff]  ;;  %s1133_s1 = sshll.u32 %s1130_s24, 4  ;;  %s1119_s15 = scalar_lea.sflag [#allocation4], %s1943_s3  ;;  %s1134_s1 = int_to_ptr.hbm [resolvable:$true] %s1133_s1 }
  0x46   : > { %706 = vmatpush.bf16.msra.mxu0 %v1371_v26  ;;  %1389 = vmatpush.bf16.msra.mxu3 %v1371_v26  ;;  %v1368_v29 = vld [vmem:[#allocation7 + $0x20] sm:$0xff]  ;;  %v1367_v30 = vld [vmem:[#allocation7 + $0x18] sm:$0xff]  ;;  %v1366_v31 = vld [vmem:[#allocation7 + $0x10] sm:$0xff]  ;;  %s1687_s16 = sshra.s32 %s1134_s1, 4  ;;  %s1693_s11 = scalar_lea.hbm %s2121_s13, 64  ;;  %s1688_s16 = int_to_ptr.hbm [resolvable:$true] %s1687_s16 }
  0x47   : > { %vm551_vm0 = vcmp.lt.s32.totalorder %v1961_v5, 16  ;;  %v1365_v32 = vld [vmem:[#allocation7 + $0x8] sm:$0xff]  ;;  %v1364_v37 = vld [vmem:[#allocation7] sm:$0xff]  ;;  %vm747_vm13 = vcmp.lt.s32.totalorder %v1961_v5, 32  ;;  %s1689_s27 = scalar_lea.hbm %s1688_s16, 32  ;;  %p1694_p9 = scmp.lt.s32.totalorder %s1688_s16, %s2121_s13 }
  0x48   : > { %p1690_p1 = scmp.ne.s32.totalorder %s1688_s16, %s1689_s27  ;;  %p1695_p2 = scmp.lt.s32.totalorder %s1693_s11, %s1689_s27 }
  0x4a   : > { %707 = vmatpush.bf16.msra.mxu0 %v1370_v27  ;;  %1390 = vmatpush.bf16.msra.mxu3 %v1370_v27  ;;  %p1691_p4 = pnand %p1690_p1, %p1913_p3  ;;  %p1696_p10 = por %p1695_p2, %p1694_p9 }
  0x4c   : > { %539 = vadd.xlane.f32.xlu1 %v530_v2  ;;  %535 = vadd.xlane.f32.xlu0 %v528_v3  ;;  %p1692_p8 = pneg %p1691_p4 }
  0x4e   : > { %708 = vmatpush.bf16.msra.mxu0 %v1369_v28  ;;  %1391 = vmatpush.bf16.msra.mxu3 %v1369_v28  ;;  %p1697_p11 = pnand %p1696_p10, %p1692_p8 }
  0x52   : > { %709 = vmatpush.bf16.msra.mxu0 %v1368_v29  ;;  %1392 = vmatpush.bf16.msra.mxu3 %v1368_v29  ;;  %v1492_v29 = vld [vmem:[%s2112_s4] ss:$0 sm:$0xff] }
  0x56   : > { %710 = vmatpush.bf16.msra.mxu0 %v1367_v30  ;;  %1393 = vmatpush.bf16.msra.mxu3 %v1367_v30 }
  0x5a   : > { %711 = vmatpush.bf16.msra.mxu0 %v1366_v31  ;;  %1394 = vmatpush.bf16.msra.mxu3 %v1366_v31 }
  0x5e   : > { %712 = vmatpush.bf16.msra.mxu0 %v1365_v32  ;;  %1395 = vmatpush.bf16.msra.mxu3 %v1365_v32 }
  0x62   : > { %713 = vmatpush.bf16.msra.mxu0 %v1364_v37  ;;  %1396 = vmatpush.bf16.msra.mxu3 %v1364_v37 }
  0xb7   : > { %v538_v6 = vpop.xlane.xlu1 %537  ;;  %v534_v7 = vpop.xlane.xlu0 %533 }
  0xb8   : > { %v543_v8 = vmul.f32 0.0625, %v538_v6  ;;  %v541_v9 = vmul.f32 0.0625, %v534_v7  ;;  %v1490_v7 = vld [vmem:[#allocation5] ss:$0 sm:$0xff] }
  0xba   : > { %v547_v10 = vsub.f32 %v529_v0, %v543_v8  ;;  %v545_v11 = vsub.f32 %v527_v1, %v541_v9 }
  0xbc   : > { %v1966_v12 = vsel %vm551_vm0, %v547_v10, 0.0  ;;  %v1970_v13 = vsel %vm551_vm0, %v545_v11, 0.0 }
  0xbd   : > { %v560_v14 = vmul.f32 %v1966_v12, %v1966_v12  ;;  %v558_v15 = vmul.f32 %v1970_v13, %v1970_v13 }
  0xbf   : > { %v540_v16 = vpop.xlane.xlu1 %539  ;;  %566 = vadd.xlane.f32.xlu0 %v560_v14  ;;  %562 = vadd.xlane.f32.xlu2 %v558_v15  ;;  %v536_v17 = vpop.xlane.xlu0 %535 }
  0xc0   : > { %v544_v18 = vmul.f32 0.0625, %v540_v16  ;;  %v542_v19 = vmul.f32 0.0625, %v536_v17  ;;  %v1491_v16 = vld [vmem:[%s2110_s2] ss:$0 sm:$0xff] }
  0xc2   : > { %v548_v20 = vsub.f32 %v530_v2, %v544_v18  ;;  %v546_v21 = vsub.f32 %v528_v3, %v542_v19 }
  0xc4   : > { %v1978_v22 = vsel %vm551_vm0, %v548_v20, 0.0  ;;  %v1982_v23 = vsel %vm551_vm0, %v546_v21, 0.0 }
  0xc5   : > { %v561_v24 = vmul.f32 %v1978_v22, %v1978_v22  ;;  %v559_v25 = vmul.f32 %v1982_v23, %v1982_v23 }
  0xc7   : > { %568 = vadd.xlane.f32.xlu1 %v561_v24  ;;  %564 = vadd.xlane.f32.xlu2 %v559_v25 }
 0x132   : > { %v563_v33 = vpop.xlane.xlu2 %562  ;;  %v567_v34 = vpop.xlane.xlu0 %566 }
 0x133   : > { %v570_v35 = vmul.f32 0.0625, %v563_v33  ;;  %v572_v36 = vmul.f32 0.0625, %v567_v34 }
 0x135   : > { %v574_v38 = vadd.f32 1e-05, %v570_v35  ;;  %v576_v39 = vadd.f32 1e-05, %v572_v36 }
 0x137   : > { %1499 = vrsqrt.f32 %v574_v38  ;;  %vm604_vm1 = vweird.f32 %v576_v39  ;;  %vm584_vm4 = vweird.f32 %v574_v38 }
 0x138   : > { %1501 = vrsqrt.f32 %v576_v39 }
 0x13a   : > { %v569_v40 = vpop.xlane.xlu1 %568  ;;  %v565_v41 = vpop.xlane.xlu2 %564 }
 0x13b   : > { %v573_v42 = vmul.f32 0.0625, %v569_v40  ;;  %v571_v43 = vmul.f32 0.0625, %v565_v41 }
 0x13d   : > { %v1500_v44 = vpop.eup %1499  ;;  %v577_v45 = vadd.f32 1e-05, %v573_v42  ;;  %v575_v46 = vadd.f32 1e-05, %v571_v43 }
 0x13e   : > { %v1502_v47 = vpop.eup %1501  ;;  %v579_v48 = vmul.f32 %v1500_v44, %v574_v38  ;;  %vm585_vm3 = vweird.f32 %v1500_v44 }
 0x13f   : > { %v599_v49 = vmul.f32 %v1502_v47, %v576_v39  ;;  %1503 = vrsqrt.f32 %v577_v45  ;;  %vm605_vm2 = vweird.f32 %v1502_v47  ;;  %vm586_vm6 = vmor %vm584_vm4, %vm585_vm3  ;;  %vm614_vm7 = vweird.f32 %v577_v45 }
 0x140   : > { %v580_v50 = vmul.f32 %v1500_v44, %v579_v48  ;;  %1505 = vrsqrt.f32 %v575_v46  ;;  %vm606_vm5 = vmor %vm604_vm1, %vm605_vm2  ;;  %vm594_vm11 = vweird.f32 %v575_v46 }
 0x141   : > { %v600_v51 = vmul.f32 %v1502_v47, %v599_v49 }
 0x142   : > { %v581_v52 = vmul.f32 0.5, %v580_v50 }
 0x143   : > { %v601_v53 = vmul.f32 0.5, %v600_v51 }
 0x144   : > { %v582_v54 = vsub.f32 1.5, %v581_v52 }
 0x145   : > { %v1504_v55 = vpop.eup %1503  ;;  %v602_v56 = vsub.f32 1.5, %v601_v53 }
 0x146   : > { %v1506_v57 = vpop.eup %1505  ;;  %v609_v58 = vmul.f32 %v1504_v55, %v577_v45  ;;  %v583_v59 = vmul.f32 %v1500_v44, %v582_v54  ;;  %vm615_vm8 = vweird.f32 %v1504_v55 }
 0x147   : > { %v603_v60 = vmul.f32 %v1502_v47, %v602_v56  ;;  %v589_v61 = vmul.f32 %v1506_v57, %v575_v46  ;;  %vm595_vm9 = vweird.f32 %v1506_v57  ;;  %vm616_vm10 = vmor %vm614_vm7, %vm615_vm8 }
 0x148   : > { %v610_v62 = vmul.f32 %v1504_v55, %v609_v58  ;;  %v587_v3 = vsel %vm586_vm6, %v1500_v44, %v583_v59  ;;  %vm596_vm12 = vmor %vm594_vm11, %vm595_vm9 }
 0x149   : > { %v590_v63 = vmul.f32 %v1506_v57, %v589_v61  ;;  %v607_v1 = vsel %vm606_vm5, %v1502_v47, %v603_v60  ;;  %v618_v10 = vmul.f32 %v587_v3, %v1970_v13  ;;  %v1379_v60 = vld [vmem:[#allocation8 + $0x38] sm:$0xff]  ;;  %v1378_v61 = vld [vmem:[#allocation8 + $0x30] sm:$0xff] }
 0x14a   : > { %v611_v0 = vmul.f32 0.5, %v610_v62  ;;  %v620_v8 = vmul.f32 %v607_v1, %v1966_v12  ;;  %902 = vmatpush.bf16.msra.mxu1 %v1379_v60  ;;  %v1377_v62 = vld [vmem:[#allocation8 + $0x28] sm:$0xff]  ;;  %v1374_v1 = vld [vmem:[#allocation8 + $0x10] sm:$0xff] }
 0x14b   : > { %v591_v2 = vmul.f32 0.5, %v590_v63  ;;  %v625_v20 = vmul.f32 %v1490_v7, %v618_v10  ;;  %v1376_v63 = vld [vmem:[#allocation8 + $0x20] sm:$0xff] }
 0x14c   : > { %v612_v4 = vsub.f32 1.5, %v611_v0  ;;  %v627_v18 = vmul.f32 %v1490_v7, %v620_v8  ;;  %v1375_v0 = vld [vmem:[#allocation8 + $0x18] sm:$0xff] }
 0x14d   : > { %v592_v6 = vsub.f32 1.5, %v591_v2  ;;  %v632_v25 = vadd.f32 %v1491_v16, %v625_v20  ;;  %v1373_v2 = vld [vmem:[#allocation8 + $0x8] sm:$0xff] }
 0x14e   : > { %v613_v9 = vmul.f32 %v1504_v55, %v612_v4  ;;  %v634_v24 = vadd.f32 %v1491_v16, %v627_v18  ;;  %903 = vmatpush.bf16.msra.mxu1 %v1378_v61 }
 0x14f   : > { %v593_v11 = vmul.f32 %v1506_v57, %v592_v6  ;;  %v1372_v6 = vld [vmem:[#allocation8] sm:$0xff] }
 0x150   : > { %v617_v14 = vsel %vm616_vm10, %v1504_v55, %v613_v9 }
 0x151   : > { %v597_v15 = vsel %vm596_vm12, %v1506_v57, %v593_v11  ;;  %v621_v17 = vmul.f32 %v617_v14, %v1978_v22 }
 0x152   : > { %v619_v19 = vmul.f32 %v597_v15, %v1982_v23  ;;  %904 = vmatpush.bf16.msra.mxu1 %v1377_v62 }
 0x153   : > { %v628_v12 = vmul.f32 %v1490_v7, %v621_v17 }
 0x154   : > { %v626_v21 = vmul.f32 %v1490_v7, %v619_v19 }
 0x155   : > { %v635_v13 = vadd.f32 %v1491_v16, %v628_v12 }
 0x156   : > { %v633_v26 = vadd.f32 %v1491_v16, %v626_v21  ;;  %905 = vmatpush.bf16.msra.mxu1 %v1376_v63  ;;  %v1495_v63 = vld [vmem:[%s2116_s8] ss:$0 sm:$0xff] }
 0x157   : > { %v654_v27 = vpack.c.bf16 %v635_v13, %v634_v24 }
 0x158   : > { %v653_v28 = vpack.c.bf16 %v633_v26, %v632_v25 }
 0x159   : > { %719 = vmatmul.bf16.vlgmr.msra.gmra.mxu3 %v654_v27 }
 0x15a   : > { %714 = vmatmul.bf16.vlgmr.msra.gmra.mxu0 %v653_v28  ;;  %906 = vmatpush.bf16.msra.mxu1 %v1375_v0 }
 0x15e   : > { %907 = vmatpush.bf16.msra.mxu1 %v1374_v1 }
 0x162   : > { %908 = vmatpush.bf16.msra.mxu1 %v1373_v2 }
 0x166   : > { %909 = vmatpush.bf16.msra.mxu1 %v1372_v6 }
 0x1d7   : > { %v715_v30 = vpop.f32.mrf.mxu0 }
 0x1d8   : > { %v716_v22 = vadd.f32 %v1492_v29, %v715_v30 }
 0x1da   : > { %v725_v31 = vmax.f32 %v716_v22, 0.0 }
 0x1dc   : > { %731 = vadd.xlane.f32.xlu2 %v725_v31  ;;  %v720_v23 = vpop.f32.mrf.mxu3 }
 0x1dd   : > { %v721_v32 = vadd.f32 %v1492_v29, %v720_v23 }
 0x1df   : > { %v727_v33 = vmax.f32 %v721_v32, 0.0  ;;  %v717_v34 = vpop.f32.mrf.mxu0 }
 0x1e0   : > { %v718_v35 = vadd.f32 %v1492_v29, %v717_v34 }
 0x1e1   : > { %735 = vadd.xlane.f32.xlu1 %v727_v33 }
 0x1e2   : > { %v726_v36 = vmax.f32 %v718_v35, 0.0 }
 0x1e4   : > { %733 = vadd.xlane.f32.xlu0 %v726_v36  ;;  %v722_v37 = vpop.f32.mrf.mxu3 }
 0x1e5   : > { %v723_v38 = vadd.f32 %v1492_v29, %v722_v37 }
 0x1e7   : > { %v728_v39 = vmax.f32 %v723_v38, 0.0 }
 0x1e9   : > { %737 = vadd.xlane.f32.xlu2 %v728_v39 }
 0x24f   : > { %v732_v40 = vpop.xlane.xlu2 %731 }
 0x250   : > { %v739_v41 = vmul.f32 0.03125, %v732_v40 }
 0x252   : > { %v743_v42 = vsub.f32 %v725_v31, %v739_v41 }
 0x254   : > { %v736_v43 = vpop.xlane.xlu1 %735  ;;  %v2001_v44 = vsel %vm747_vm13, %v743_v42, 0.0 }
 0x255   : > { %v741_v45 = vmul.f32 0.03125, %v736_v43  ;;  %v754_v46 = vmul.f32 %v2001_v44, %v2001_v44 }
 0x257   : > { %v745_v47 = vsub.f32 %v727_v33, %v741_v45  ;;  %758 = vadd.xlane.f32.xlu0 %v754_v46  ;;  %v734_v48 = vpop.xlane.xlu0 %733  ;;  %v1494_v45 = vld [vmem:[%s2114_s6] ss:$0 sm:$0xff] }
 0x258   : > { %v740_v49 = vmul.f32 0.03125, %v734_v48 }
 0x259   : > { %v2007_v50 = vsel %vm747_vm13, %v745_v47, 0.0 }
 0x25a   : > { %v744_v51 = vsub.f32 %v726_v36, %v740_v49  ;;  %v756_v52 = vmul.f32 %v2007_v50, %v2007_v50  ;;  %v1493_v36 = vld [vmem:[%s2113_s5] ss:$0 sm:$0xff] }
 0x25c   : > { %v738_v53 = vpop.xlane.xlu2 %737  ;;  %762 = vadd.xlane.f32.xlu2 %v756_v52  ;;  %v2013_v54 = vsel %vm747_vm13, %v744_v51, 0.0 }
 0x25d   : > { %v742_v55 = vmul.f32 0.03125, %v738_v53  ;;  %v755_v56 = vmul.f32 %v2013_v54, %v2013_v54 }
 0x25f   : > { %v746_v57 = vsub.f32 %v728_v39, %v742_v55  ;;  %760 = vadd.xlane.f32.xlu1 %v755_v56 }
 0x261   : > { %v2019_v58 = vsel %vm747_vm13, %v746_v57, 0.0 }
 0x262   : > { %v757_v59 = vmul.f32 %v2019_v58, %v2019_v58 }
 0x264   : > { %764 = vadd.xlane.f32.xlu0 %v757_v59 }
 0x2ca   : > { %v759_v3 = vpop.xlane.xlu0 %758 }
 0x2cb   : > { %v766_v4 = vmul.f32 0.03125, %v759_v3 }
 0x2cd   : > { %v770_v7 = vadd.f32 1e-05, %v766_v4 }
 0x2cf   : > { %1507 = vrsqrt.f32 %v770_v7  ;;  %v763_v8 = vpop.xlane.xlu2 %762  ;;  %vm780_vm15 = vweird.f32 %v770_v7 }
 0x2d0   : > { %v768_v9 = vmul.f32 0.03125, %v763_v8 }
 0x2d2   : > { %v772_v10 = vadd.f32 1e-05, %v768_v9  ;;  %v761_v11 = vpop.xlane.xlu1 %760 }
 0x2d3   : > { %v767_v14 = vmul.f32 0.03125, %v761_v11 }
 0x2d4   : > { %1509 = vrsqrt.f32 %v772_v10  ;;  %vm800_vm8 = vweird.f32 %v772_v10 }
 0x2d5   : > { %v1508_v15 = vpop.eup %1507  ;;  %v771_v16 = vadd.f32 1e-05, %v767_v14 }
 0x2d6   : > { %v775_v17 = vmul.f32 %v1508_v15, %v770_v7  ;;  %vm781_vm14 = vweird.f32 %v1508_v15 }
 0x2d7   : > { %1511 = vrsqrt.f32 %v771_v16  ;;  %v765_v18 = vpop.xlane.xlu0 %764  ;;  %vm782_vm0 = vmor %vm780_vm15, %vm781_vm14  ;;  %vm790_vm2 = vweird.f32 %v771_v16 }
 0x2d8   : > { %v776_v19 = vmul.f32 %v1508_v15, %v775_v17  ;;  %v769_v20 = vmul.f32 0.03125, %v765_v18 }
 0x2da   : > { %v777_v12 = vmul.f32 0.5, %v776_v19  ;;  %v773_v21 = vadd.f32 1e-05, %v769_v20  ;;  %v1510_v24 = vpop.eup %1509 }
 0x2db   : > { %v795_v27 = vmul.f32 %v1510_v24, %v772_v10  ;;  %vm801_vm5 = vweird.f32 %v1510_v24 }
 0x2dc   : > { %v778_v13 = vsub.f32 1.5, %v777_v12  ;;  %1513 = vrsqrt.f32 %v773_v21  ;;  %vm810_vm6 = vweird.f32 %v773_v21  ;;  %vm802_vm9 = vmor %vm800_vm8, %vm801_vm5 }
 0x2dd   : > { %v1512_v25 = vpop.eup %1511  ;;  %v796_v22 = vmul.f32 %v1510_v24, %v795_v27 }
 0x2de   : > { %v779_v26 = vmul.f32 %v1508_v15, %v778_v13  ;;  %v785_v28 = vmul.f32 %v1512_v25, %v771_v16  ;;  %vm791_vm1 = vweird.f32 %v1512_v25 }
 0x2df   : > { %v797_v37 = vmul.f32 0.5, %v796_v22  ;;  %vm792_vm3 = vmor %vm790_vm2, %vm791_vm1 }
 0x2e0   : > { %v786_v29 = vmul.f32 %v1512_v25, %v785_v28  ;;  %v783_v23 = vsel %vm782_vm0, %v1508_v15, %v779_v26 }
 0x2e1   : > { %v814_v35 = vmul.f32 %v783_v23, %v2001_v44  ;;  %v798_v46 = vsub.f32 1.5, %v797_v37  ;;  %v1387_v23 = vld [vmem:[#allocation10 + $0x38] sm:$0xff]  ;;  %v1381_v37 = vld [vmem:[#allocation10 + $0x8] sm:$0xff] }
 0x2e2   : > { %v1514_v30 = vpop.eup %1513  ;;  %v787_v31 = vmul.f32 0.5, %v786_v29  ;;  %1095 = vmatpush.bf16.msra.mxu2 %v1387_v23 }
 0x2e3   : > { %v805_v32 = vmul.f32 %v1514_v30, %v773_v21  ;;  %v821_v43 = vmul.f32 %v1493_v36, %v814_v35  ;;  %vm811_vm4 = vweird.f32 %v1514_v30  ;;  %v799_v51 = vmul.f32 %v1510_v24, %v798_v46  ;;  %v1383_v35 = vld [vmem:[#allocation10 + $0x18] sm:$0xff] }
 0x2e4   : > { %v788_v33 = vsub.f32 1.5, %v787_v31  ;;  %vm812_vm7 = vmor %vm810_vm6, %vm811_vm4 }
 0x2e5   : > { %v806_v34 = vmul.f32 %v1514_v30, %v805_v32  ;;  %v828_v48 = vadd.f32 %v1494_v45, %v821_v43  ;;  %v1386_v32 = vld [vmem:[#allocation10 + $0x30] sm:$0xff] }
 0x2e6   : > { %v789_v38 = vmul.f32 %v1512_v25, %v788_v33  ;;  %1096 = vmatpush.bf16.msra.mxu2 %v1386_v32  ;;  %v1385_v33 = vld [vmem:[#allocation10 + $0x28] sm:$0xff] }
 0x2e7   : > { %v807_v39 = vmul.f32 0.5, %v806_v34  ;;  %v1384_v34 = vld [vmem:[#allocation10 + $0x20] sm:$0xff] }
 0x2e8   : > { %v793_v40 = vsel %vm792_vm3, %v1512_v25, %v789_v38 }
 0x2e9   : > { %v808_v41 = vsub.f32 1.5, %v807_v39  ;;  %v815_v42 = vmul.f32 %v793_v40, %v2013_v54  ;;  %v803_v54 = vsel %vm802_vm9, %v1510_v24, %v799_v51  ;;  %v1380_v39 = vld [vmem:[#allocation10] sm:$0xff] }
 0x2ea   : > { %v816_v56 = vmul.f32 %v803_v54, %v2007_v50  ;;  %1097 = vmatpush.bf16.msra.mxu2 %v1385_v33  ;;  %v1498_v33 = vld [vmem:[%s2120_s12] ss:$0 sm:$0xff] }
 0x2eb   : > { %v822_v44 = vmul.f32 %v1493_v36, %v815_v42  ;;  %v809_v47 = vmul.f32 %v1514_v30, %v808_v41 }
 0x2ec   : > { %v823_v59 = vmul.f32 %v1493_v36, %v816_v56 }
 0x2ed   : > { %v829_v49 = vadd.f32 %v1494_v45, %v822_v44  ;;  %v813_v53 = vsel %vm812_vm7, %v1514_v30, %v809_v47 }
 0x2ee   : > { %v817_v55 = vmul.f32 %v813_v53, %v2019_v58  ;;  %v830_v61 = vadd.f32 %v1494_v45, %v823_v59  ;;  %1098 = vmatpush.bf16.msra.mxu2 %v1384_v34 }
 0x2ef   : > { %v849_v52 = vpack.c.bf16 %v829_v49, %v828_v48 }
 0x2f0   : > { %v824_v57 = vmul.f32 %v1493_v36, %v817_v55  ;;  %v1382_v36 = vld [vmem:[#allocation10 + $0x10] sm:$0xff] }
 0x2f1   : > { %910 = vmatmul.bf16.vlgmr.msra.gmra.mxu1 %v849_v52 }
 0x2f2   : > { %v831_v60 = vadd.f32 %v1494_v45, %v824_v57  ;;  %1099 = vmatpush.bf16.msra.mxu2 %v1383_v35 }
 0x2f4   : > { %v850_v62 = vpack.c.bf16 %v831_v60, %v830_v61 }
 0x2f6   : > { %1100 = vmatpush.bf16.msra.mxu2 %v1382_v36 }
 0x2fa   : > { %1101 = vmatpush.bf16.msra.mxu2 %v1381_v37 }
 0x2fe   : > { %1102 = vmatpush.bf16.msra.mxu2 %v1380_v39 }
 0x301   : > { %915 = vmatmul.bf16.gmra.mxu1 %v850_v62 }
 0x36e   : > { %v911_v0 = vpop.f32.mrf.mxu1 }
 0x36f   : > { %v912_v1 = vadd.f32 %v1495_v63, %v911_v0 }
 0x371   : > { %v921_v2 = vmax.f32 %v912_v1, 0.0 }
 0x373   : > { %927 = vadd.xlane.f32.xlu1 %v921_v2 }
 0x376   : > { %v913_v3 = vpop.f32.mrf.mxu1 }
 0x377   : > { %v914_v4 = vadd.f32 %v1495_v63, %v913_v3 }
 0x379   : > { %v922_v6 = vmax.f32 %v914_v4, 0.0 }
 0x37b   : > { %929 = vadd.xlane.f32.xlu2 %v922_v6 }
 0x37e   : > { %v916_v58 = vpop.f32.mrf.mxu1 }
 0x37f   : > { %v917_v50 = vadd.f32 %v1495_v63, %v916_v58 }
 0x381   : > { %v923_v7 = vmax.f32 %v917_v50, 0.0 }
 0x383   : > { %931 = vadd.xlane.f32.xlu0 %v923_v7 }
 0x386   : > { %v918_v8 = vpop.f32.mrf.mxu1 }
 0x387   : > { %v919_v9 = vadd.f32 %v1495_v63, %v918_v8  ;;  %v1497_v8 = vld [vmem:[%s2118_s10] ss:$0 sm:$0xff] }
 0x389   : > { %v924_v10 = vmax.f32 %v919_v9, 0.0 }
 0x38b   : > { %933 = vadd.xlane.f32.xlu1 %v924_v10 }
 0x3e6   : > { %v928_v11 = vpop.xlane.xlu1 %927 }
 0x3e7   : > { %v935_v14 = vmul.f32 0.03125, %v928_v11 }
 0x3e9   : > { %v939_v15 = vsub.f32 %v921_v2, %v935_v14  ;;  %v1496_v2 = vld [vmem:[%s2117_s9] ss:$0 sm:$0xff] }
 0x3eb   : > { %v2038_v16 = vsel %vm747_vm13, %v939_v15, 0.0 }
 0x3ec   : > { %v947_v17 = vmul.f32 %v2038_v16, %v2038_v16 }
 0x3ee   : > { %v930_v18 = vpop.xlane.xlu2 %929  ;;  %951 = vadd.xlane.f32.xlu2 %v947_v17 }
 0x3ef   : > { %v936_v19 = vmul.f32 0.03125, %v930_v18 }
 0x3f1   : > { %v940_v20 = vsub.f32 %v922_v6, %v936_v19 }
 0x3f3   : > { %v2044_v12 = vsel %vm747_vm13, %v940_v20, 0.0 }
 0x3f4   : > { %v948_v21 = vmul.f32 %v2044_v12, %v2044_v12 }
 0x3f6   : > { %953 = vadd.xlane.f32.xlu0 %v948_v21  ;;  %v932_v24 = vpop.xlane.xlu0 %931 }
 0x3f7   : > { %v937_v13 = vmul.f32 0.03125, %v932_v24 }
 0x3f9   : > { %v941_v25 = vsub.f32 %v923_v7, %v937_v13 }
 0x3fb   : > { %v2050_v26 = vsel %vm747_vm13, %v941_v25, 0.0 }
 0x3fc   : > { %v949_v27 = vmul.f32 %v2050_v26, %v2050_v26 }
 0x3fe   : > { %v934_v28 = vpop.xlane.xlu1 %933  ;;  %955 = vadd.xlane.f32.xlu1 %v949_v27 }
 0x3ff   : > { %v938_v29 = vmul.f32 0.03125, %v934_v28 }
 0x401   : > { %v942_v30 = vsub.f32 %v924_v10, %v938_v29 }
 0x403   : > { %v2056_v22 = vsel %vm747_vm13, %v942_v30, 0.0 }
 0x404   : > { %v950_v31 = vmul.f32 %v2056_v22, %v2056_v22 }
 0x406   : > { %957 = vadd.xlane.f32.xlu2 %v950_v31 }
 0x461   : > { %v952_v5 = vpop.xlane.xlu2 %951 }
 0x462   : > { %v959_v38 = vmul.f32 0.03125, %v952_v5 }
 0x464   : > { %v963_v40 = vadd.f32 1e-05, %v959_v38 }
 0x466   : > { %1515 = vrsqrt.f32 %v963_v40  ;;  %vm973_vm11 = vweird.f32 %v963_v40 }
 0x469   : > { %v954_v41 = vpop.xlane.xlu0 %953 }
 0x46a   : > { %v960_v42 = vmul.f32 0.03125, %v954_v41 }
 0x46c   : > { %v1516_v43 = vpop.eup %1515  ;;  %v964_v45 = vadd.f32 1e-05, %v960_v42 }
 0x46d   : > { %v968_v46 = vmul.f32 %v1516_v43, %v963_v40  ;;  %vm974_vm10 = vweird.f32 %v1516_v43 }
 0x46e   : > { %1517 = vrsqrt.f32 %v964_v45  ;;  %vm975_vm12 = vmor %vm973_vm11, %vm974_vm10  ;;  %vm983_vm14 = vweird.f32 %v964_v45 }
 0x46f   : > { %v969_v44 = vmul.f32 %v1516_v43, %v968_v46 }
 0x471   : > { %v970_v47 = vmul.f32 0.5, %v969_v44  ;;  %v956_v48 = vpop.xlane.xlu1 %955 }
 0x472   : > { %v961_v49 = vmul.f32 0.03125, %v956_v48 }
 0x473   : > { %v971_v51 = vsub.f32 1.5, %v970_v47 }
 0x474   : > { %v1518_v52 = vpop.eup %1517  ;;  %v965_v53 = vadd.f32 1e-05, %v961_v49 }
 0x475   : > { %v972_v54 = vmul.f32 %v1516_v43, %v971_v51  ;;  %v978_v55 = vmul.f32 %v1518_v52, %v964_v45  ;;  %vm984_vm13 = vweird.f32 %v1518_v52 }
 0x476   : > { %1519 = vrsqrt.f32 %v965_v53  ;;  %vm985_vm15 = vmor %vm983_vm14, %vm984_vm13  ;;  %vm993_vm1 = vweird.f32 %v965_v53 }
 0x477   : > { %v979_v56 = vmul.f32 %v1518_v52, %v978_v55  ;;  %v976_v60 = vsel %vm975_vm12, %v1516_v43, %v972_v54 }
 0x478   : > { %v1007_v1 = vmul.f32 %v976_v60, %v2038_v16 }
 0x479   : > { %v980_v57 = vmul.f32 0.5, %v979_v56  ;;  %v958_v59 = vpop.xlane.xlu2 %957 }
 0x47a   : > { %v962_v61 = vmul.f32 0.03125, %v958_v59  ;;  %v1014_v7 = vmul.f32 %v1496_v2, %v1007_v1 }
 0x47b   : > { %v981_v62 = vsub.f32 1.5, %v980_v57 }
 0x47c   : > { %v1520_v63 = vpop.eup %1519  ;;  %v966_v0 = vadd.f32 1e-05, %v962_v61  ;;  %v1021_v15 = vadd.f32 %v1497_v8, %v1014_v7 }
 0x47d   : > { %v982_v3 = vmul.f32 %v1518_v52, %v981_v62  ;;  %v988_v4 = vmul.f32 %v1520_v63, %v965_v53  ;;  %vm994_vm0 = vweird.f32 %v1520_v63 }
 0x47e   : > { %1521 = vrsqrt.f32 %v966_v0  ;;  %vm995_vm2 = vmor %vm993_vm1, %vm994_vm0  ;;  %vm1003_vm4 = vweird.f32 %v966_v0 }
 0x47f   : > { %v986_v6 = vsel %vm985_vm15, %v1518_v52, %v982_v3  ;;  %v989_v58 = vmul.f32 %v1520_v63, %v988_v4 }
 0x480   : > { %v1008_v50 = vmul.f32 %v986_v6, %v2044_v12 }
 0x481   : > { %v990_v9 = vmul.f32 0.5, %v989_v58 }
 0x482   : > { %v1015_v10 = vmul.f32 %v1496_v2, %v1008_v50 }
 0x483   : > { %v991_v11 = vsub.f32 1.5, %v990_v9 }
 0x484   : > { %v1522_v14 = vpop.eup %1521  ;;  %v1022_v16 = vadd.f32 %v1497_v8, %v1015_v10 }
 0x485   : > { %v992_v17 = vmul.f32 %v1520_v63, %v991_v11  ;;  %v998_v18 = vmul.f32 %v1522_v14, %v966_v0  ;;  %vm1004_vm3 = vweird.f32 %v1522_v14 }
 0x486   : > { %v1042_v19 = vpack.c.bf16 %v1022_v16, %v1021_v15  ;;  %vm1005_vm5 = vmor %vm1003_vm4, %vm1004_vm3 }
 0x487   : > { %v999_v20 = vmul.f32 %v1522_v14, %v998_v18  ;;  %v996_v12 = vsel %vm995_vm2, %v1520_v63, %v992_v17 }
 0x488   : > { %1103 = vmatmul.bf16.vlgmr.msra.gmra.mxu2 %v1042_v19  ;;  %v1009_v13 = vmul.f32 %v996_v12, %v2050_v26 }
 0x489   : > { %v1000_v21 = vmul.f32 0.5, %v999_v20 }
 0x48a   : > { %v1016_v29 = vmul.f32 %v1496_v2, %v1009_v13 }
 0x48b   : > { %v1001_v24 = vsub.f32 1.5, %v1000_v21 }
 0x48c   : > { %v1023_v31 = vadd.f32 %v1497_v8, %v1016_v29 }
 0x48d   : > { %v1002_v25 = vmul.f32 %v1522_v14, %v1001_v24 }
 0x48f   : > { %v1006_v27 = vsel %vm1005_vm5, %v1522_v14, %v1002_v25 }
 0x490   : > { %v1010_v28 = vmul.f32 %v1006_v27, %v2056_v22 }
 0x492   : > { %v1017_v30 = vmul.f32 %v1496_v2, %v1010_v28 }
 0x494   : > { %v1024_v23 = vadd.f32 %v1497_v8, %v1017_v30 }
 0x496   : > { %v1043_v32 = vpack.c.bf16 %v1024_v23, %v1023_v31 }
 0x498   : > { %1108 = vmatmul.bf16.gmra.mxu2 %v1043_v32 }
 0x50b   : > { %v1104_v34 = vpop.f32.mrf.mxu2 }
 0x50c   : > { %v1105_v35 = vadd.f32 %v1498_v33, %v1104_v34 }
 0x50e   : > { %1114 = vst [vmem:[%s524_s20] sm:$0xff] %v1105_v35 }
 0x513   : > { %v1106_v26 = vpop.f32.mrf.mxu2 }
 0x514   : > { %v1107_v36 = vadd.f32 %v1498_v33, %v1106_v26 }
 0x516   : > { %1115 = vst [vmem:[%s524_s20 + $0x8] sm:$0xff] %v1107_v36 }
 0x51b   : > { %v1109_v22 = vpop.f32.mrf.mxu2 }
 0x51c   : > { %v1110_v37 = vadd.f32 %v1498_v33, %v1109_v22 }
 0x51e   : > { %1116 = vst [vmem:[%s524_s20 + $0x10] sm:$0xff] %v1110_v37 }
 0x523   : > { %v1111_v5 = vpop.f32.mrf.mxu2 }
 0x524   : > { %v1112_v38 = vadd.f32 %v1498_v33, %v1111_v5 }
 0x526   : > { %1117 = vst [vmem:[%s524_s20 + $0x18] sm:$0xff] %v1112_v38 }
 0x527   : > { %1700 = shalt.err (!%p1697_p11)
}
 0x528   : > { %s1757_s3 = smov 128   ;;  %s1758_s20 = smov 8  }
 0x529   : > { %1415 = dma.vmem_to_hbm [thread:$0]  (%p1913_p3), %s1132_s21, 512, %s1134_s1, %s1119_s15, %s1757_s3, %s1757_s3, %s1758_s20  }
 0x52a PF: > { %s1148_s7 = sand.u32 1, %s1735_s25   ;;  %p2142_p12 = scmp.ge.s32.totalorder %s1747_s28, 2 }
 0x52b   : > { %s1149_s23 = scalar_lea.sflag [#allocation4], %s1148_s7 }
 0x52c   : > { %p1435_p13 = pnand %p2142_p12, %p1864_p6 }
 0x52e   : > { %p1436_p0 = pneg %p1435_p13 }
 0x530   : > { %1730 = dma.done.wait (%p1436_p0), %s1149_s23, 512  }
 0x531   : > { %1732 = vsyncadd (%p1436_p0), %s1149_s23, 4294966784  ;;  %s2143_s24 = sld [smem:[#allocation16_spill]]  ;;  %p28_p5 = scmp.ge.s32.totalorder %s1903_s30, 4  }
 0x532   : > { %s2144_s27 = sld [smem:[#allocation18_spill]]  ;;  %s2145_s25 = smov %s1739_s26 }
 0x533   : > { %s2147_s28 = smov %s1903_s30  ;;  %30 = sbr.rel (!%p28_p5) target bundleno = 12 (0xc), region = 133 }
 0x537   : > { %s2146_s26 = smov %s2143_s24 }
 0x538   :  { %1155 = vsyncpa [#allocation3], 1 }
 0x539   :  { %1157 = vsyncpa [#allocation3 + $0x1], 1 }
 0x53a   :  { %1158 = vsyncpa [#allocation6], 1 }
 0x53b   :  { %1159 = vsyncpa [#allocation9], 1 }
 0x53c   :  { %1160 = vsyncpa [#allocation4], 1 }
 0x53d   :  { %1162 = vsyncpa [#allocation4 + $0x1], 1 }

</bundles_post_ra>
